<compile_context>
chip_gen: v7x
topology: tpu7x:2x2x1
jax: 0.10.0
libtpu: 0.0.40
codegen_flags: <defaults>
</compile_context>

<pallas_src>
import jax
import jax.numpy as jnp
from jax.experimental import pallas as pl
from jax.experimental.pallas import tpu as pltpu


# ----------------------------------------------------------------------------
# Fused whole-network Pallas kernel
# ----------------------------------------------------------------------------
def _make_fused_kernel(pool_channels):
    C2 = pool_channels  # channel count at both pooling points (= 2c)

    def conv(a, w_ref, bias_ref):
        # a: (Hin, Win*Cin) value; w_ref: (KH, Win*Cin, Wo*Cout); bias: (1, Wo*Cout)
        kh = w_ref.shape[0]
        ho = a.shape[0] - kh + 1
        acc = jnp.dot(a[0:ho, :], w_ref[0], preferred_element_type=jnp.float32)
        for i in range(1, kh):
            acc = acc + jnp.dot(a[i:i + ho, :], w_ref[i],
                                preferred_element_type=jnp.float32)
        return jnp.maximum(acc + bias_ref[...], 0.0)

    def pool(y):
        # y: (H, W*C2).  Result: (H//2, (W-1)*C2) with the pooled values
        # sitting at even spatial columns (odd columns are garbage and get
        # zero weight in the next conv's banded matrix).
        h, wc = y.shape
        hmax = jnp.maximum(y[:, :wc - C2], y[:, C2:])          # horizontal pair max
        vfull = jnp.maximum(hmax[:h - 1, :], hmax[1:, :])      # vertical pair max
        hp = h // 2
        row = jax.lax.broadcasted_iota(jnp.int32, (hp, h - 1), 0)
        col = jax.lax.broadcasted_iota(jnp.int32, (hp, h - 1), 1)
        sel = (col == 2 * row).astype(jnp.float32)             # pick even rows
        return jnp.dot(sel, vfull, preferred_element_type=jnp.float32)

    def kernel(x_ref, b1, r1, b2, r2, b3, r3, b4, r4, b5, r5, o_ref):
        a = x_ref[0]                 # (H, W*1)
        a = conv(a, b1, r1)          # (30, 30*c)
        a = conv(a, b2, r2)          # (28, 28*2c)
        a = pool(a)                  # (14, 27*2c)  valid cols at even w
        a = conv(a, b3, r3)          # (12, 12*2c)
        a = conv(a, b4, r4)          # (10, 10*2c)
        a = pool(a)                  # (5,  9*2c)   valid cols at even w
        a = conv(a, b5, r5)          # (4,  4*c)
        o_ref[0] = a

    return kernel


# ----------------------------------------------------------------------------
# Wrapper-side parameter folding (runs once under jit, plain XLA)
# ----------------------------------------------------------------------------
def _banded_weights(w, scale, bias, w_logical, stride):
    """Fold a KHxKW conv (+ per-out-channel scale) into KH banded matrices.

    B[i, s*Cin+ci, wo*Cout+co] = w[i, j, ci, co] * scale[co], s = stride*(wo+j)
    bias_row[0, wo*Cout+co]    = bias[co]
    """
    kh, kw, cin, cout = w.shape
    wo_n = w_logical - kw + 1
    wphys = stride * (w_logical - 1) + 1
    ws = (w * scale.reshape(1, 1, 1, cout)).astype(jnp.float32)

    j = jnp.arange(kw).reshape(kw, 1, 1, 1)
    ci = jnp.arange(cin).reshape(1, cin, 1, 1)
    wo = jnp.arange(wo_n).reshape(1, 1, wo_n, 1)
    co = jnp.arange(cout).reshape(1, 1, 1, cout)
    src = jnp.broadcast_to((stride * (wo + j)) * cin + ci,
                           (kw, cin, wo_n, cout)).reshape(-1)
    dst = jnp.broadcast_to(wo * cout + co, (kw, cin, wo_n, cout)).reshape(-1)
    vals = jnp.broadcast_to(ws[:, :, :, None, :],
                            (kh, kw, cin, wo_n, cout)).reshape(kh, -1)

    B = jnp.zeros((kh, wphys * cin, wo_n * cout), jnp.float32)
    B = B.at[:, src, dst].set(vals)
    row = jnp.tile(bias.astype(jnp.float32), (wo_n,)).reshape(1, wo_n * cout)
    return B, row


def _fuse_conv_bn(conv, bn, eps=1e-5):
    # TODO(synk): BatchNorm is reproduced in eval mode (running statistics);
    # training-mode batch statistics are not computed here.
    w, b_conv = conv
    gamma, beta, mean, var = bn
    scale = gamma / jnp.sqrt(var + eps)
    bias = scale * (b_conv - mean) + beta
    return w, scale, bias


# ----------------------------------------------------------------------------
# Forward pass (mirrors model_heatmap2.features)
# ----------------------------------------------------------------------------
def model_heatmap2_forward(params, x_nchw):
    n, cin, h, w = x_nchw.shape
    c = params["conv1"][0].shape[-1]

    # geometry: conv3, conv3, pool, conv3, conv3, pool, conv2
    h1, w1 = h - 2, w - 2
    h2, w2 = h1 - 2, w1 - 2
    hp1, wp1 = h2 // 2, w2 // 2
    h3, w3 = hp1 - 2, wp1 - 2
    h4, w4 = h3 - 2, w3 - 2
    hp2, wp2 = h4 // 2, w4 // 2
    h5, w5 = hp2 - 1, wp2 - 1

    w1p, s1, bb1 = _fuse_conv_bn(params["conv1"], params["bn1"])
    w2p, s2, bb2 = _fuse_conv_bn(params["conv2"], params["bn2"])
    w3p, s3, bb3 = _fuse_conv_bn(params["conv3"], params["bn3"])
    w4p, s4, bb4 = _fuse_conv_bn(params["conv4"], params["bn4"])
    w5p, b5c = params["conv5"]

    B1, r1 = _banded_weights(w1p, s1, bb1, w, 1)
    B2, r2 = _banded_weights(w2p, s2, bb2, w1, 1)
    B3, r3 = _banded_weights(w3p, s3, bb3, wp1, 2)   # folds pool1 col-subsample
    B4, r4 = _banded_weights(w4p, s4, bb4, w3, 1)
    B5, r5 = _banded_weights(w5p, jnp.ones((c,), jnp.float32), b5c, wp2, 2)

    x2 = jnp.transpose(x_nchw, (0, 2, 3, 1)).astype(jnp.float32)
    x2 = x2.reshape(n, h, w * cin)                   # (N, H, W*Cin) layout

    kernel = _make_fused_kernel(2 * c)
    full = lambda shp: pl.BlockSpec(shp, (lambda b: (0,) * len(shp)))
    out = pl.pallas_call(
        kernel,
        out_shape=jax.ShapeDtypeStruct((n, h5, w5 * c), jnp.float32),
        grid=(n,),
        in_specs=[
            pl.BlockSpec((1, h, w * cin), lambda b: (b, 0, 0)),
            full(B1.shape), full(r1.shape),
            full(B2.shape), full(r2.shape),
            full(B3.shape), full(r3.shape),
            full(B4.shape), full(r4.shape),
            full(B5.shape), full(r5.shape),
        ],
        out_specs=pl.BlockSpec((1, h5, w5 * c), lambda b: (b, 0, 0)),
        compiler_params=pltpu.CompilerParams(dimension_semantics=("parallel",)),
    )(x2, B1, r1, B2, r2, B3, r3, B4, r4, B5, r5)

    out = out.reshape(n, h5, w5, c)
    return jnp.transpose(out, (0, 3, 1, 2))          # -> NCHW


# ----------------------------------------------------------------------------
# Deterministic parameter construction (synthetic, matches module shapes)
# ----------------------------------------------------------------------------
def _conv_init(key, kh, kw, cin, cout):
    kw_key, kb_key = jax.random.split(key)
    fan_in = kh * kw * cin
    bound = 1.0 / (fan_in ** 0.5)
    w = jax.random.uniform(kw_key, (kh, kw, cin, cout), jnp.float32, -bound, bound)
    b = jax.random.uniform(kb_key, (cout,), jnp.float32, -bound, bound)
    return w, b


def _bn_init(cout, layer_idx):
    i = jnp.arange(cout, dtype=jnp.float32)
    gamma = 1.0 + 0.05 * i + 0.01 * layer_idx
    beta = 0.01 * i - 0.02 * layer_idx
    mean = 0.02 * i - 0.01 * layer_idx
    var = 1.0 + 0.03 * i + 0.02 * layer_idx
    return gamma, beta, mean, var


def init_params(key, channels=4):
    c = channels
    keys = jax.random.split(key, 5)
    return {
        "conv1": _conv_init(keys[0], 3, 3, 1, c),
        "bn1": _bn_init(c, 1),
        "conv2": _conv_init(keys[1], 3, 3, c, 2 * c),
        "bn2": _bn_init(2 * c, 2),
        "conv3": _conv_init(keys[2], 3, 3, 2 * c, 2 * c),
        "bn3": _bn_init(2 * c, 3),
        "conv4": _conv_init(keys[3], 3, 3, 2 * c, 2 * c),
        "bn4": _bn_init(2 * c, 4),
        "conv5": _conv_init(keys[4], 2, 2, 2 * c, c),
    }


# ----------------------------------------------------------------------------
# Pure-JAX reference (eval-mode BN) for correctness checking
# ----------------------------------------------------------------------------
def _reference_forward(params, x_nchw, eps=1e-5):
    hp = jax.lax.Precision.HIGHEST

    def conv(x, w, b):
        y = jax.lax.conv_general_dilated(
            x, w, window_strides=(1, 1), padding="VALID",
            dimension_numbers=("NCHW", "HWIO", "NCHW"), precision=hp)
        return y + b.reshape(1, -1, 1, 1)

    def bn(x, stats):
        gamma, beta, mean, var = stats
        inv = gamma / jnp.sqrt(var + eps)
        return (x - mean.reshape(1, -1, 1, 1)) * inv.reshape(1, -1, 1, 1) \
            + beta.reshape(1, -1, 1, 1)

    def pool(x):
        return jax.lax.reduce_window(x, -jnp.inf, jax.lax.max,
                                     (1, 1, 2, 2), (1, 1, 2, 2), "VALID")

    relu = lambda t: jnp.maximum(t, 0.0)
    x = x_nchw.astype(jnp.float32)
    x = relu(bn(conv(x, *params["conv1"]), params["bn1"]))
    x = relu(bn(conv(x, *params["conv2"]), params["bn2"]))
    x = pool(x)
    x = relu(bn(conv(x, *params["conv3"]), params["bn3"]))
    x = relu(bn(conv(x, *params["conv4"]), params["bn4"]))
    x = pool(x)
    x = relu(conv(x, *params["conv5"]))
    return x


if __name__ == "__main__":
    key = jax.random.PRNGKey(0)
    pkey, xkey = jax.random.split(key)

    channels = 4
    params = init_params(pkey, channels=channels)

    # Input in PyTorch NCHW convention: (batch=2, in_channels=1, 32, 32).
    x = jax.random.normal(xkey, (2, 1, 32, 32), dtype=jnp.float32)

    fwd = jax.jit(lambda inp: model_heatmap2_forward(params, inp))
    out = fwd(x)
    jax.block_until_ready(out)

    # Expected: 32 -> 30 -> 28 -> pool 14 -> 12 -> 10 -> pool 5 -> 4 (k=2 conv)
    assert out.shape == (2, channels, 4, 4), out.shape
    assert bool(jnp.all(jnp.isfinite(out)))

    ref = _reference_forward(params, x)
    max_err = float(jnp.max(jnp.abs(out - ref)))
    assert max_err < 5e-2, f"mismatch vs reference: max abs err {max_err}"

    print("KERNEL_OK")
</pallas_src>

<mosaic_0001>
module attributes {stable_mosaic.version = 11 : i64} {
  func.func @kernel(%arg0: i32, %arg1: memref<1x32x32xf32, #tpu.memory_space<vmem>>, %arg2: memref<3x32x120xf32, #tpu.memory_space<vmem>>, %arg3: memref<1x120xf32, #tpu.memory_space<vmem>>, %arg4: memref<3x120x224xf32, #tpu.memory_space<vmem>>, %arg5: memref<1x224xf32, #tpu.memory_space<vmem>>, %arg6: memref<3x216x96xf32, #tpu.memory_space<vmem>>, %arg7: memref<1x96xf32, #tpu.memory_space<vmem>>, %arg8: memref<3x96x80xf32, #tpu.memory_space<vmem>>, %arg9: memref<1x80xf32, #tpu.memory_space<vmem>>, %arg10: memref<2x72x16xf32, #tpu.memory_space<vmem>>, %arg11: memref<1x16xf32, #tpu.memory_space<vmem>>, %arg12: memref<1x4x16xf32, #tpu.memory_space<vmem>>) attributes {dimension_semantics = [#tpu.dimension_semantics<parallel>], iteration_bounds = array<i64: 2>, scalar_prefetch = 0 : i64, scratch_operands = 0 : i64, tpu.core_type = #tpu.core_type<tc>, window_params = [{transform_indices = @transform_0, window_bounds = array<i64: 1, 32, 32>}, {pipeline_mode = #tpu.pipeline_mode<synchronous>, transform_indices = @transform_1, window_bounds = array<i64: 3, 32, 120>}, {pipeline_mode = #tpu.pipeline_mode<synchronous>, transform_indices = @transform_2, window_bounds = array<i64: 1, 120>}, {pipeline_mode = #tpu.pipeline_mode<synchronous>, transform_indices = @transform_3, window_bounds = array<i64: 3, 120, 224>}, {pipeline_mode = #tpu.pipeline_mode<synchronous>, transform_indices = @transform_4, window_bounds = array<i64: 1, 224>}, {pipeline_mode = #tpu.pipeline_mode<synchronous>, transform_indices = @transform_5, window_bounds = array<i64: 3, 216, 96>}, {pipeline_mode = #tpu.pipeline_mode<synchronous>, transform_indices = @transform_6, window_bounds = array<i64: 1, 96>}, {pipeline_mode = #tpu.pipeline_mode<synchronous>, transform_indices = @transform_7, window_bounds = array<i64: 3, 96, 80>}, {pipeline_mode = #tpu.pipeline_mode<synchronous>, transform_indices = @transform_8, window_bounds = array<i64: 1, 80>}, {pipeline_mode = #tpu.pipeline_mode<synchronous>, transform_indices = @transform_9, window_bounds = array<i64: 2, 72, 16>}, {pipeline_mode = #tpu.pipeline_mode<synchronous>, transform_indices = @transform_10, window_bounds = array<i64: 1, 16>}, {transform_indices = @transform_11, window_bounds = array<i64: 1, 4, 16>}]} {
    %c0 = arith.constant 0 : index
    %c0_0 = arith.constant 0 : index
    %c0_1 = arith.constant 0 : index
    %0 = vector.load %arg1[%c0, %c0_0, %c0_1] : memref<1x32x32xf32, #tpu.memory_space<vmem>>, vector<1x32x32xf32>
    %1 = vector.shape_cast %0 : vector<1x32x32xf32> to vector<32x32xf32>
    %2 = vector.extract_strided_slice %1 {offsets = [0, 0], sizes = [30, 32], strides = [1, 1]} : vector<32x32xf32> to vector<30x32xf32>
    %c0_2 = arith.constant 0 : index
    %c0_3 = arith.constant 0 : index
    %c0_4 = arith.constant 0 : index
    %3 = vector.load %arg2[%c0_2, %c0_3, %c0_4] : memref<3x32x120xf32, #tpu.memory_space<vmem>>, vector<1x32x120xf32>
    %4 = vector.shape_cast %3 : vector<1x32x120xf32> to vector<32x120xf32>
    %cst = arith.constant dense<0.000000e+00> : vector<30x120xf32>
    %5 = tpu.matmul %2, %4, %cst {dimension_numbers = #tpu.dot_dimension_numbers<[1], [0], [0], [1], [0, 0, 1, 1], [], []>} : vector<30x32xf32>, vector<32x120xf32>, vector<30x120xf32> -> vector<30x120xf32>
    %6 = vector.extract_strided_slice %1 {offsets = [1, 0], sizes = [30, 32], strides = [1, 1]} : vector<32x32xf32> to vector<30x32xf32>
    %c1 = arith.constant 1 : index
    %c0_5 = arith.constant 0 : index
    %c0_6 = arith.constant 0 : index
    %7 = vector.load %arg2[%c1, %c0_5, %c0_6] : memref<3x32x120xf32, #tpu.memory_space<vmem>>, vector<1x32x120xf32>
    %8 = vector.shape_cast %7 : vector<1x32x120xf32> to vector<32x120xf32>
    %cst_7 = arith.constant dense<0.000000e+00> : vector<30x120xf32>
    %9 = tpu.matmul %6, %8, %cst_7 {dimension_numbers = #tpu.dot_dimension_numbers<[1], [0], [0], [1], [0, 0, 1, 1], [], []>} : vector<30x32xf32>, vector<32x120xf32>, vector<30x120xf32> -> vector<30x120xf32>
    %10 = arith.addf %5, %9 : vector<30x120xf32>
    %11 = vector.extract_strided_slice %1 {offsets = [2, 0], sizes = [30, 32], strides = [1, 1]} : vector<32x32xf32> to vector<30x32xf32>
    %c2 = arith.constant 2 : index
    %c0_8 = arith.constant 0 : index
    %c0_9 = arith.constant 0 : index
    %12 = vector.load %arg2[%c2, %c0_8, %c0_9] : memref<3x32x120xf32, #tpu.memory_space<vmem>>, vector<1x32x120xf32>
    %13 = vector.shape_cast %12 : vector<1x32x120xf32> to vector<32x120xf32>
    %cst_10 = arith.constant dense<0.000000e+00> : vector<30x120xf32>
    %14 = tpu.matmul %11, %13, %cst_10 {dimension_numbers = #tpu.dot_dimension_numbers<[1], [0], [0], [1], [0, 0, 1, 1], [], []>} : vector<30x32xf32>, vector<32x120xf32>, vector<30x120xf32> -> vector<30x120xf32>
    %15 = arith.addf %10, %14 : vector<30x120xf32>
    %c0_11 = arith.constant 0 : index
    %c0_12 = arith.constant 0 : index
    %16 = vector.load %arg3[%c0_11, %c0_12] : memref<1x120xf32, #tpu.memory_space<vmem>>, vector<1x120xf32>
    %17 = vector.broadcast %16 : vector<1x120xf32> to vector<30x120xf32>
    %18 = arith.addf %15, %17 : vector<30x120xf32>
    %cst_13 = arith.constant 0.000000e+00 : f32
    %19 = vector.broadcast %cst_13 : f32 to vector<30x120xf32>
    %20 = arith.maximumf %18, %19 : vector<30x120xf32>
    %21 = vector.extract_strided_slice %20 {offsets = [0, 0], sizes = [28, 120], strides = [1, 1]} : vector<30x120xf32> to vector<28x120xf32>
    %c0_14 = arith.constant 0 : index
    %c0_15 = arith.constant 0 : index
    %c0_16 = arith.constant 0 : index
    %22 = vector.load %arg4[%c0_14, %c0_15, %c0_16] : memref<3x120x224xf32, #tpu.memory_space<vmem>>, vector<1x120x224xf32>
    %23 = vector.shape_cast %22 : vector<1x120x224xf32> to vector<120x224xf32>
    %cst_17 = arith.constant dense<0.000000e+00> : vector<28x224xf32>
    %24 = tpu.matmul %21, %23, %cst_17 {dimension_numbers = #tpu.dot_dimension_numbers<[1], [0], [0], [1], [0, 0, 1, 1], [], []>} : vector<28x120xf32>, vector<120x224xf32>, vector<28x224xf32> -> vector<28x224xf32>
    %25 = vector.extract_strided_slice %20 {offsets = [1, 0], sizes = [28, 120], strides = [1, 1]} : vector<30x120xf32> to vector<28x120xf32>
    %c1_18 = arith.constant 1 : index
    %c0_19 = arith.constant 0 : index
    %c0_20 = arith.constant 0 : index
    %26 = vector.load %arg4[%c1_18, %c0_19, %c0_20] : memref<3x120x224xf32, #tpu.memory_space<vmem>>, vector<1x120x224xf32>
    %27 = vector.shape_cast %26 : vector<1x120x224xf32> to vector<120x224xf32>
    %cst_21 = arith.constant dense<0.000000e+00> : vector<28x224xf32>
    %28 = tpu.matmul %25, %27, %cst_21 {dimension_numbers = #tpu.dot_dimension_numbers<[1], [0], [0], [1], [0, 0, 1, 1], [], []>} : vector<28x120xf32>, vector<120x224xf32>, vector<28x224xf32> -> vector<28x224xf32>
    %29 = arith.addf %24, %28 : vector<28x224xf32>
    %30 = vector.extract_strided_slice %20 {offsets = [2, 0], sizes = [28, 120], strides = [1, 1]} : vector<30x120xf32> to vector<28x120xf32>
    %c2_22 = arith.constant 2 : index
    %c0_23 = arith.constant 0 : index
    %c0_24 = arith.constant 0 : index
    %31 = vector.load %arg4[%c2_22, %c0_23, %c0_24] : memref<3x120x224xf32, #tpu.memory_space<vmem>>, vector<1x120x224xf32>
    %32 = vector.shape_cast %31 : vector<1x120x224xf32> to vector<120x224xf32>
    %cst_25 = arith.constant dense<0.000000e+00> : vector<28x224xf32>
    %33 = tpu.matmul %30, %32, %cst_25 {dimension_numbers = #tpu.dot_dimension_numbers<[1], [0], [0], [1], [0, 0, 1, 1], [], []>} : vector<28x120xf32>, vector<120x224xf32>, vector<28x224xf32> -> vector<28x224xf32>
    %34 = arith.addf %29, %33 : vector<28x224xf32>
    %c0_26 = arith.constant 0 : index
    %c0_27 = arith.constant 0 : index
    %35 = vector.load %arg5[%c0_26, %c0_27] : memref<1x224xf32, #tpu.memory_space<vmem>>, vector<1x224xf32>
    %36 = vector.broadcast %35 : vector<1x224xf32> to vector<28x224xf32>
    %37 = arith.addf %34, %36 : vector<28x224xf32>
    %cst_28 = arith.constant 0.000000e+00 : f32
    %38 = vector.broadcast %cst_28 : f32 to vector<28x224xf32>
    %39 = arith.maximumf %37, %38 : vector<28x224xf32>
    %40 = vector.extract_strided_slice %39 {offsets = [0, 0], sizes = [28, 216], strides = [1, 1]} : vector<28x224xf32> to vector<28x216xf32>
    %41 = vector.extract_strided_slice %39 {offsets = [0, 8], sizes = [28, 216], strides = [1, 1]} : vector<28x224xf32> to vector<28x216xf32>
    %42 = arith.maximumf %40, %41 : vector<28x216xf32>
    %43 = vector.extract_strided_slice %42 {offsets = [0, 0], sizes = [27, 216], strides = [1, 1]} : vector<28x216xf32> to vector<27x216xf32>
    %44 = vector.extract_strided_slice %42 {offsets = [1, 0], sizes = [27, 216], strides = [1, 1]} : vector<28x216xf32> to vector<27x216xf32>
    %45 = arith.maximumf %43, %44 : vector<27x216xf32>
    %46 = tpu.iota {dimensions = array<i32: 0>} : vector<14x27xi32>
    %47 = tpu.iota {dimensions = array<i32: 1>} : vector<14x27xi32>
    %c2_i32 = arith.constant 2 : i32
    %48 = vector.broadcast %c2_i32 : i32 to vector<14x27xi32>
    %49 = arith.muli %48, %46 : vector<14x27xi32>
    %50 = arith.cmpi eq, %47, %49 : vector<14x27xi32>
    %51 = arith.extui %50 : vector<14x27xi1> to vector<14x27xi32>
    %52 = arith.sitofp %51 : vector<14x27xi32> to vector<14x27xf32>
    %cst_29 = arith.constant dense<0.000000e+00> : vector<14x216xf32>
    %53 = tpu.matmul %52, %45, %cst_29 {dimension_numbers = #tpu.dot_dimension_numbers<[1], [0], [0], [1], [0, 0, 1, 1], [], []>} : vector<14x27xf32>, vector<27x216xf32>, vector<14x216xf32> -> vector<14x216xf32>
    %54 = vector.extract_strided_slice %53 {offsets = [0, 0], sizes = [12, 216], strides = [1, 1]} : vector<14x216xf32> to vector<12x216xf32>
    %c0_30 = arith.constant 0 : index
    %c0_31 = arith.constant 0 : index
    %c0_32 = arith.constant 0 : index
    %55 = vector.load %arg6[%c0_30, %c0_31, %c0_32] : memref<3x216x96xf32, #tpu.memory_space<vmem>>, vector<1x216x96xf32>
    %56 = vector.shape_cast %55 : vector<1x216x96xf32> to vector<216x96xf32>
    %cst_33 = arith.constant dense<0.000000e+00> : vector<12x96xf32>
    %57 = tpu.matmul %54, %56, %cst_33 {dimension_numbers = #tpu.dot_dimension_numbers<[1], [0], [0], [1], [0, 0, 1, 1], [], []>} : vector<12x216xf32>, vector<216x96xf32>, vector<12x96xf32> -> vector<12x96xf32>
    %58 = vector.extract_strided_slice %53 {offsets = [1, 0], sizes = [12, 216], strides = [1, 1]} : vector<14x216xf32> to vector<12x216xf32>
    %c1_34 = arith.constant 1 : index
    %c0_35 = arith.constant 0 : index
    %c0_36 = arith.constant 0 : index
    %59 = vector.load %arg6[%c1_34, %c0_35, %c0_36] : memref<3x216x96xf32, #tpu.memory_space<vmem>>, vector<1x216x96xf32>
    %60 = vector.shape_cast %59 : vector<1x216x96xf32> to vector<216x96xf32>
    %cst_37 = arith.constant dense<0.000000e+00> : vector<12x96xf32>
    %61 = tpu.matmul %58, %60, %cst_37 {dimension_numbers = #tpu.dot_dimension_numbers<[1], [0], [0], [1], [0, 0, 1, 1], [], []>} : vector<12x216xf32>, vector<216x96xf32>, vector<12x96xf32> -> vector<12x96xf32>
    %62 = arith.addf %57, %61 : vector<12x96xf32>
    %63 = vector.extract_strided_slice %53 {offsets = [2, 0], sizes = [12, 216], strides = [1, 1]} : vector<14x216xf32> to vector<12x216xf32>
    %c2_38 = arith.constant 2 : index
    %c0_39 = arith.constant 0 : index
    %c0_40 = arith.constant 0 : index
    %64 = vector.load %arg6[%c2_38, %c0_39, %c0_40] : memref<3x216x96xf32, #tpu.memory_space<vmem>>, vector<1x216x96xf32>
    %65 = vector.shape_cast %64 : vector<1x216x96xf32> to vector<216x96xf32>
    %cst_41 = arith.constant dense<0.000000e+00> : vector<12x96xf32>
    %66 = tpu.matmul %63, %65, %cst_41 {dimension_numbers = #tpu.dot_dimension_numbers<[1], [0], [0], [1], [0, 0, 1, 1], [], []>} : vector<12x216xf32>, vector<216x96xf32>, vector<12x96xf32> -> vector<12x96xf32>
    %67 = arith.addf %62, %66 : vector<12x96xf32>
    %c0_42 = arith.constant 0 : index
    %c0_43 = arith.constant 0 : index
    %68 = vector.load %arg7[%c0_42, %c0_43] : memref<1x96xf32, #tpu.memory_space<vmem>>, vector<1x96xf32>
    %69 = vector.broadcast %68 : vector<1x96xf32> to vector<12x96xf32>
    %70 = arith.addf %67, %69 : vector<12x96xf32>
    %cst_44 = arith.constant 0.000000e+00 : f32
    %71 = vector.broadcast %cst_44 : f32 to vector<12x96xf32>
    %72 = arith.maximumf %70, %71 : vector<12x96xf32>
    %73 = vector.extract_strided_slice %72 {offsets = [0, 0], sizes = [10, 96], strides = [1, 1]} : vector<12x96xf32> to vector<10x96xf32>
    %c0_45 = arith.constant 0 : index
    %c0_46 = arith.constant 0 : index
    %c0_47 = arith.constant 0 : index
    %74 = vector.load %arg8[%c0_45, %c0_46, %c0_47] : memref<3x96x80xf32, #tpu.memory_space<vmem>>, vector<1x96x80xf32>
    %75 = vector.shape_cast %74 : vector<1x96x80xf32> to vector<96x80xf32>
    %cst_48 = arith.constant dense<0.000000e+00> : vector<10x80xf32>
    %76 = tpu.matmul %73, %75, %cst_48 {dimension_numbers = #tpu.dot_dimension_numbers<[1], [0], [0], [1], [0, 0, 1, 1], [], []>} : vector<10x96xf32>, vector<96x80xf32>, vector<10x80xf32> -> vector<10x80xf32>
    %77 = vector.extract_strided_slice %72 {offsets = [1, 0], sizes = [10, 96], strides = [1, 1]} : vector<12x96xf32> to vector<10x96xf32>
    %c1_49 = arith.constant 1 : index
    %c0_50 = arith.constant 0 : index
    %c0_51 = arith.constant 0 : index
    %78 = vector.load %arg8[%c1_49, %c0_50, %c0_51] : memref<3x96x80xf32, #tpu.memory_space<vmem>>, vector<1x96x80xf32>
    %79 = vector.shape_cast %78 : vector<1x96x80xf32> to vector<96x80xf32>
    %cst_52 = arith.constant dense<0.000000e+00> : vector<10x80xf32>
    %80 = tpu.matmul %77, %79, %cst_52 {dimension_numbers = #tpu.dot_dimension_numbers<[1], [0], [0], [1], [0, 0, 1, 1], [], []>} : vector<10x96xf32>, vector<96x80xf32>, vector<10x80xf32> -> vector<10x80xf32>
    %81 = arith.addf %76, %80 : vector<10x80xf32>
    %82 = vector.extract_strided_slice %72 {offsets = [2, 0], sizes = [10, 96], strides = [1, 1]} : vector<12x96xf32> to vector<10x96xf32>
    %c2_53 = arith.constant 2 : index
    %c0_54 = arith.constant 0 : index
    %c0_55 = arith.constant 0 : index
    %83 = vector.load %arg8[%c2_53, %c0_54, %c0_55] : memref<3x96x80xf32, #tpu.memory_space<vmem>>, vector<1x96x80xf32>
    %84 = vector.shape_cast %83 : vector<1x96x80xf32> to vector<96x80xf32>
    %cst_56 = arith.constant dense<0.000000e+00> : vector<10x80xf32>
    %85 = tpu.matmul %82, %84, %cst_56 {dimension_numbers = #tpu.dot_dimension_numbers<[1], [0], [0], [1], [0, 0, 1, 1], [], []>} : vector<10x96xf32>, vector<96x80xf32>, vector<10x80xf32> -> vector<10x80xf32>
    %86 = arith.addf %81, %85 : vector<10x80xf32>
    %c0_57 = arith.constant 0 : index
    %c0_58 = arith.constant 0 : index
    %87 = vector.load %arg9[%c0_57, %c0_58] : memref<1x80xf32, #tpu.memory_space<vmem>>, vector<1x80xf32>
    %88 = vector.broadcast %87 : vector<1x80xf32> to vector<10x80xf32>
    %89 = arith.addf %86, %88 : vector<10x80xf32>
    %cst_59 = arith.constant 0.000000e+00 : f32
    %90 = vector.broadcast %cst_59 : f32 to vector<10x80xf32>
    %91 = arith.maximumf %89, %90 : vector<10x80xf32>
    %92 = vector.extract_strided_slice %91 {offsets = [0, 0], sizes = [10, 72], strides = [1, 1]} : vector<10x80xf32> to vector<10x72xf32>
    %93 = vector.extract_strided_slice %91 {offsets = [0, 8], sizes = [10, 72], strides = [1, 1]} : vector<10x80xf32> to vector<10x72xf32>
    %94 = arith.maximumf %92, %93 : vector<10x72xf32>
    %95 = vector.extract_strided_slice %94 {offsets = [0, 0], sizes = [9, 72], strides = [1, 1]} : vector<10x72xf32> to vector<9x72xf32>
    %96 = vector.extract_strided_slice %94 {offsets = [1, 0], sizes = [9, 72], strides = [1, 1]} : vector<10x72xf32> to vector<9x72xf32>
    %97 = arith.maximumf %95, %96 : vector<9x72xf32>
    %98 = tpu.iota {dimensions = array<i32: 0>} : vector<5x9xi32>
    %99 = tpu.iota {dimensions = array<i32: 1>} : vector<5x9xi32>
    %c2_i32_60 = arith.constant 2 : i32
    %100 = vector.broadcast %c2_i32_60 : i32 to vector<5x9xi32>
    %101 = arith.muli %100, %98 : vector<5x9xi32>
    %102 = arith.cmpi eq, %99, %101 : vector<5x9xi32>
    %103 = arith.extui %102 : vector<5x9xi1> to vector<5x9xi32>
    %104 = arith.sitofp %103 : vector<5x9xi32> to vector<5x9xf32>
    %cst_61 = arith.constant dense<0.000000e+00> : vector<5x72xf32>
    %105 = tpu.matmul %104, %97, %cst_61 {dimension_numbers = #tpu.dot_dimension_numbers<[1], [0], [0], [1], [0, 0, 1, 1], [], []>} : vector<5x9xf32>, vector<9x72xf32>, vector<5x72xf32> -> vector<5x72xf32>
    %106 = vector.extract_strided_slice %105 {offsets = [0, 0], sizes = [4, 72], strides = [1, 1]} : vector<5x72xf32> to vector<4x72xf32>
    %c0_62 = arith.constant 0 : index
    %c0_63 = arith.constant 0 : index
    %c0_64 = arith.constant 0 : index
    %107 = vector.load %arg10[%c0_62, %c0_63, %c0_64] : memref<2x72x16xf32, #tpu.memory_space<vmem>>, vector<1x72x16xf32>
    %108 = vector.shape_cast %107 : vector<1x72x16xf32> to vector<72x16xf32>
    %cst_65 = arith.constant dense<0.000000e+00> : vector<4x16xf32>
    %109 = tpu.matmul %106, %108, %cst_65 {dimension_numbers = #tpu.dot_dimension_numbers<[1], [0], [0], [1], [0, 0, 1, 1], [], []>} : vector<4x72xf32>, vector<72x16xf32>, vector<4x16xf32> -> vector<4x16xf32>
    %110 = vector.extract_strided_slice %105 {offsets = [1, 0], sizes = [4, 72], strides = [1, 1]} : vector<5x72xf32> to vector<4x72xf32>
    %c1_66 = arith.constant 1 : index
    %c0_67 = arith.constant 0 : index
    %c0_68 = arith.constant 0 : index
    %111 = vector.load %arg10[%c1_66, %c0_67, %c0_68] : memref<2x72x16xf32, #tpu.memory_space<vmem>>, vector<1x72x16xf32>
    %112 = vector.shape_cast %111 : vector<1x72x16xf32> to vector<72x16xf32>
    %cst_69 = arith.constant dense<0.000000e+00> : vector<4x16xf32>
    %113 = tpu.matmul %110, %112, %cst_69 {dimension_numbers = #tpu.dot_dimension_numbers<[1], [0], [0], [1], [0, 0, 1, 1], [], []>} : vector<4x72xf32>, vector<72x16xf32>, vector<4x16xf32> -> vector<4x16xf32>
    %114 = arith.addf %109, %113 : vector<4x16xf32>
    %c0_70 = arith.constant 0 : index
    %c0_71 = arith.constant 0 : index
    %115 = vector.load %arg11[%c0_70, %c0_71] : memref<1x16xf32, #tpu.memory_space<vmem>>, vector<1x16xf32>
    %116 = vector.broadcast %115 : vector<1x16xf32> to vector<4x16xf32>
    %117 = arith.addf %114, %116 : vector<4x16xf32>
    %cst_72 = arith.constant 0.000000e+00 : f32
    %118 = vector.broadcast %cst_72 : f32 to vector<4x16xf32>
    %119 = arith.maximumf %117, %118 : vector<4x16xf32>
    %c0_73 = arith.constant 0 : index
    %c0_74 = arith.constant 0 : index
    %c0_75 = arith.constant 0 : index
    %120 = vector.load %arg12[%c0_73, %c0_74, %c0_75] : memref<1x4x16xf32, #tpu.memory_space<vmem>>, vector<1x4x16xf32>
    %121 = vector.shape_cast %120 : vector<1x4x16xf32> to vector<4x16xf32>
    %122 = vector.shape_cast %119 : vector<4x16xf32> to vector<1x4x16xf32>
    tpu.vector_store %arg12[%c0_73, %c0_74, %c0_75], %122 {strides = array<i32>} : memref<1x4x16xf32, #tpu.memory_space<vmem>>, vector<1x4x16xf32>,
    return
  }
  func.func @transform_0(%arg0: i32) -> (i32, i32, i32) {
    %c0_i32 = arith.constant 0 : i32
    %c0_i32_0 = arith.constant 0 : i32
    %c0_i32_1 = arith.constant 0 : i32
    return %arg0, %c0_i32, %c0_i32_0 : i32, i32, i32
  }
  func.func @transform_1(%arg0: i32) -> (i32, i32, i32) {
    %c0_i32 = arith.constant 0 : i32
    %c0_i32_0 = arith.constant 0 : i32
    %c0_i32_1 = arith.constant 0 : i32
    %c0_i32_2 = arith.constant 0 : i32
    return %c0_i32, %c0_i32_0, %c0_i32_1 : i32, i32, i32
  }
  func.func @transform_2(%arg0: i32) -> (i32, i32) {
    %c0_i32 = arith.constant 0 : i32
    %c0_i32_0 = arith.constant 0 : i32
    %c0_i32_1 = arith.constant 0 : i32
    return %c0_i32, %c0_i32_0 : i32, i32
  }
  func.func @transform_3(%arg0: i32) -> (i32, i32, i32) {
    %c0_i32 = arith.constant 0 : i32
    %c0_i32_0 = arith.constant 0 : i32
    %c0_i32_1 = arith.constant 0 : i32
    %c0_i32_2 = arith.constant 0 : i32
    return %c0_i32, %c0_i32_0, %c0_i32_1 : i32, i32, i32
  }
  func.func @transform_4(%arg0: i32) -> (i32, i32) {
    %c0_i32 = arith.constant 0 : i32
    %c0_i32_0 = arith.constant 0 : i32
    %c0_i32_1 = arith.constant 0 : i32
    return %c0_i32, %c0_i32_0 : i32, i32
  }
  func.func @transform_5(%arg0: i32) -> (i32, i32, i32) {
    %c0_i32 = arith.constant 0 : i32
    %c0_i32_0 = arith.constant 0 : i32
    %c0_i32_1 = arith.constant 0 : i32
    %c0_i32_2 = arith.constant 0 : i32
    return %c0_i32, %c0_i32_0, %c0_i32_1 : i32, i32, i32
  }
  func.func @transform_6(%arg0: i32) -> (i32, i32) {
    %c0_i32 = arith.constant 0 : i32
    %c0_i32_0 = arith.constant 0 : i32
    %c0_i32_1 = arith.constant 0 : i32
    return %c0_i32, %c0_i32_0 : i32, i32
  }
  func.func @transform_7(%arg0: i32) -> (i32, i32, i32) {
    %c0_i32 = arith.constant 0 : i32
    %c0_i32_0 = arith.constant 0 : i32
    %c0_i32_1 = arith.constant 0 : i32
    %c0_i32_2 = arith.constant 0 : i32
    return %c0_i32, %c0_i32_0, %c0_i32_1 : i32, i32, i32
  }
  func.func @transform_8(%arg0: i32) -> (i32, i32) {
    %c0_i32 = arith.constant 0 : i32
    %c0_i32_0 = arith.constant 0 : i32
    %c0_i32_1 = arith.constant 0 : i32
    return %c0_i32, %c0_i32_0 : i32, i32
  }
  func.func @transform_9(%arg0: i32) -> (i32, i32, i32) {
    %c0_i32 = arith.constant 0 : i32
    %c0_i32_0 = arith.constant 0 : i32
    %c0_i32_1 = arith.constant 0 : i32
    %c0_i32_2 = arith.constant 0 : i32
    return %c0_i32, %c0_i32_0, %c0_i32_1 : i32, i32, i32
  }
  func.func @transform_10(%arg0: i32) -> (i32, i32) {
    %c0_i32 = arith.constant 0 : i32
    %c0_i32_0 = arith.constant 0 : i32
    %c0_i32_1 = arith.constant 0 : i32
    return %c0_i32, %c0_i32_0 : i32, i32
  }
  func.func @transform_11(%arg0: i32) -> (i32, i32, i32) {
    %c0_i32 = arith.constant 0 : i32
    %c0_i32_0 = arith.constant 0 : i32
    %c0_i32_1 = arith.constant 0 : i32
    return %arg0, %c0_i32, %c0_i32_0 : i32, i32, i32
  }
}

</mosaic_0001>

<bundles_post_ra>
// kernel: tile.26
= control target key start
LH: loop header
LB: loop body
LE: loop exit
PB: predicated region body
PF: predicated region fallthrough
CT: control target
= control target key end

     0   :  { %s40_s0 = inlined_call_operand.vmem [shape: f32[8], index: 0, kind: input, shape index: {}]   ;;  %s41_s1 = inlined_call_operand.vmem [shape: f32[28,8], index: 1, kind: output, shape index: {}]  }
   0x1   :  { %v4_v0 = vld [vmem:[%s40_s0] ss:$0 sm:$0xff] }
   0x2   :  { %5 = vst [vmem:[%s41_s1] sm:$0xff] %v4_v0  ;;  %12 = vst [vmem:[%s41_s1 + $0x8] sm:$0xff] %v4_v0 }
   0x3   :  { %13 = vst [vmem:[%s41_s1 + $0x10] sm:$0xff] %v4_v0  ;;  %14 = vst [vmem:[%s41_s1 + $0x18] sm:$0xff] %v4_v0 }

// kernel: tile.27
= control target key start
LH: loop header
LB: loop body
LE: loop exit
PB: predicated region body
PF: predicated region fallthrough
CT: control target
= control target key end

     0   :  { %s149_s10 = smov 120   ;;  %s150_s11 = smov 104   ;;  %vm4_vm0 = vcmask 64512   ;;  %vm10_vm1 = vcmask 1048512   ;;  %vm16_vm2 = vcmask 982912   ;;  %vm22_vm3 = vcmask 917312   ;;  %s228_s0 = inlined_call_operand.vmem [shape: f32[28,8], index: 0, kind: input, shape index: {}]   ;;  %s229_s1 = inlined_call_operand.vmem [shape: f32[1,224], index: 1, kind: output, shape index: {}]  }
   0x1   :  { %v118_v0 = vld [vmem:[%s228_s0 + $0xf] sm:$0x1]   ;;  %v120_v1 = vld [vmem:[%s228_s0 + $0xd] sm:$0x1]   ;;  %v119_v2 = vld [vmem:[%s228_s0 + $0xe] sm:$0x1]  }
   0x2   :  { %8 = vrot.lane.b32.xlu0 %v118_v0, %s149_s10  ;;  %20 = vrot.lane.b32.xlu1 %v120_v1, %s150_s11  ;;  %v121_v3 = vld [vmem:[%s228_s0 + $0xc] sm:$0x1]   ;;  %s31_s16 = smov 3  ;;  %s38_s17 = smov 3  ;;  %vm28_vm4 = vcmask 851712   ;;  %vm35_vm5 = vcmask 786112  }
   0x3   :  { %s151_s18 = smov 112   ;;  %s152_s19 = smov 96   ;;  %v122_v4 = vld [vmem:[%s228_s0 + $0xb] ss:$16 sm:%s31_s16]   ;;  %v123_v5 = vld [vmem:[%s228_s0 + $0xa] ss:$16 sm:%s38_s17]  }
   0x4   :  { %s45_s24 = smov 3  ;;  %s52_s25 = smov 3  ;;  %vm42_vm6 = vcmask 720512   ;;  %vm49_vm7 = vcmask 654912   ;;  %vm56_vm8 = vcmask 589312   ;;  %vm63_vm9 = vcmask 523712  }
   0x5   :  { %s153_s26 = smov 88   ;;  %s154_s27 = smov 80   ;;  %v124_v6 = vld [vmem:[%s228_s0 + $0x9] ss:$16 sm:%s45_s24]   ;;  %v125_v7 = vld [vmem:[%s228_s0 + $0x8] ss:$16 sm:%s52_s25]  }
   0x6   :  { %14 = vrot.lane.b32.xlu0 %v119_v2, %s151_s18  ;;  %26 = vrot.lane.b32.xlu1 %v121_v3, %s152_s19  ;;  %s59_s3 = smov 3  ;;  %s66_s4 = smov 3  ;;  %vm70_vm10 = vcmask 458112   ;;  %vm77_vm11 = vcmask 392512   ;;  %vm84_vm12 = vcmask 326912   ;;  %vm91_vm13 = vcmask 261312  }
   0x7   :  { %s155_s5 = smov 72   ;;  %s156_s6 = smov 64   ;;  %v126_v8 = vld [vmem:[%s228_s0 + $0x7] ss:$16 sm:%s59_s3]   ;;  %v127_v9 = vld [vmem:[%s228_s0 + $0x6] ss:$16 sm:%s66_s4]  }
   0x8   :  { %s2_s9 = smov 3  ;;  %s73_s14 = smov 3  ;;  %vm98_vm14 = vcmask 195712   ;;  %vm105_vm15 = vcmask 130112  }
   0x9   :  { %v3_v10 = vld [vmem:[%s228_s0] ss:$16 sm:%s2_s9]   ;;  %s80_s15 = smov 3  ;;  %s157_s16 = smov 56   ;;  %v128_v11 = vld [vmem:[%s228_s0 + $0x5] ss:$16 sm:%s73_s14]  }
   0xa   :  { %33 = vrot.lane.b32.xlu0 %v122_v4, %s153_s26  ;;  %40 = vrot.lane.b32.xlu1 %v123_v5, %s154_s27  ;;  %5 = vst.msk [vmem:[#allocation0] ss:$8 sm:$0x3] %vm4_vm0, %v3_v10   ;;  %s158_s17 = smov 48   ;;  %v129_v12 = vld [vmem:[%s228_s0 + $0x4] ss:$16 sm:%s80_s15]  }
   0xb   :  { %s87_s22 = smov 3  ;;  %s94_s23 = smov 3 }
   0xc   :  { %s159_s24 = smov 40   ;;  %s160_s25 = smov 32   ;;  %v130_v13 = vld [vmem:[%s228_s0 + $0x3] ss:$16 sm:%s87_s22]   ;;  %v131_v14 = vld [vmem:[%s228_s0 + $0x2] ss:$16 sm:%s94_s23]  }
   0xd   :  { %s101_s30 = smov 3  ;;  %s161_s2 = smov 24  }
   0xe   :  { %47 = vrot.lane.b32.xlu0 %v124_v6, %s155_s5  ;;  %54 = vrot.lane.b32.xlu1 %v125_v7, %s156_s6  ;;  %s162_s3 = smov 16   ;;  %v132_v15 = vld [vmem:[%s228_s0 + $0x1] ss:$16 sm:%s101_s30]   ;;  %s163_s0 = smov 8  }
  0x12   :  { %61 = vrot.lane.b32.xlu0 %v126_v8, %s157_s16  ;;  %68 = vrot.lane.b32.xlu1 %v127_v9, %s158_s17 }
  0x16   :  { %75 = vrot.lane.b32.xlu0 %v128_v11, %s159_s24  ;;  %82 = vrot.lane.b32.xlu1 %v129_v12, %s160_s25 }
  0x1a   :  { %89 = vrot.lane.b32.xlu0 %v130_v13, %s161_s2  ;;  %96 = vrot.lane.b32.xlu1 %v131_v14, %s162_s3 }
  0x1e   :  { %103 = vrot.lane.b32.xlu0 %v132_v15, %s163_s0 }
  0x74   :  { %v9_v16 = vpop.permute.xlu0 %8   ;;  %v21_v17 = vpop.permute.xlu1 %20  }
  0x75   :  { %11 = vst.msk [vmem:[#allocation0] sm:$0x1] %vm10_vm1, %v9_v16  }
  0x78   :  { %v15_v18 = vpop.permute.xlu0 %14   ;;  %v27_v19 = vpop.permute.xlu1 %26  }
  0x79   :  { %17 = vst.msk [vmem:[#allocation0] sm:$0x1] %vm16_vm2, %v15_v18  }
  0x7a   :  { %23 = vst.msk [vmem:[#allocation0] sm:$0x1] %vm22_vm3, %v21_v17  }
  0x7b   :  { %29 = vst.msk [vmem:[#allocation0] sm:$0x1] %vm28_vm4, %v27_v19  }
  0x7c   :  { %v34_v20 = vpop.permute.xlu0 %33   ;;  %v41_v21 = vpop.permute.xlu1 %40  }
  0x7d   :  { %36 = vst.msk [vmem:[#allocation0] ss:$8 sm:$0x3] %vm35_vm5, %v34_v20  }
  0x7e   :  { %43 = vst.msk [vmem:[#allocation0] ss:$8 sm:$0x3] %vm42_vm6, %v41_v21  }
  0x80   :  { %v48_v22 = vpop.permute.xlu0 %47   ;;  %v55_v23 = vpop.permute.xlu1 %54  }
  0x81   :  { %50 = vst.msk [vmem:[#allocation0] ss:$8 sm:$0x3] %vm49_vm7, %v48_v22  }
  0x82   :  { %57 = vst.msk [vmem:[#allocation0] ss:$8 sm:$0x3] %vm56_vm8, %v55_v23  }
  0x84   :  { %v62_v24 = vpop.permute.xlu0 %61   ;;  %v69_v25 = vpop.permute.xlu1 %68  }
  0x85   :  { %64 = vst.msk [vmem:[#allocation0] ss:$8 sm:$0x3] %vm63_vm9, %v62_v24  }
  0x86   :  { %71 = vst.msk [vmem:[#allocation0] ss:$8 sm:$0x3] %vm70_vm10, %v69_v25  }
  0x88   :  { %v76_v26 = vpop.permute.xlu0 %75   ;;  %v83_v27 = vpop.permute.xlu1 %82  }
  0x89   :  { %78 = vst.msk [vmem:[#allocation0] ss:$8 sm:$0x3] %vm77_vm11, %v76_v26  }
  0x8a   :  { %85 = vst.msk [vmem:[#allocation0] ss:$8 sm:$0x3] %vm84_vm12, %v83_v27  }
  0x8c   :  { %v90_v28 = vpop.permute.xlu0 %89   ;;  %v97_v29 = vpop.permute.xlu1 %96  }
  0x8d   :  { %92 = vst.msk [vmem:[#allocation0] ss:$8 sm:$0x3] %vm91_vm13, %v90_v28  }
  0x8e   :  { %99 = vst.msk [vmem:[#allocation0] ss:$8 sm:$0x3] %vm98_vm14, %v97_v29  }
  0x90   :  { %v104_v30 = vpop.permute.xlu0 %103  }
  0x91   :  { %106 = vst.msk [vmem:[#allocation0] ss:$8 sm:$0x3] %vm105_vm15, %v104_v30  }
  0x98   :  { %v110_v31 = vld [vmem:[#allocation0] sm:$0x1]  ;;  %v114_v32 = vld [vmem:[#allocation0 + $0x8] sm:$0x1] }
  0x99   :  { %112 = vst [vmem:[%s229_s1] sm:$0x1] %v110_v31  ;;  %133 = vst [vmem:[%s229_s1 + $0x1] sm:$0x1] %v114_v32 }

// kernel: tile.22
= control target key start
LH: loop header
LB: loop body
LE: loop exit
PB: predicated region body
PF: predicated region fallthrough
CT: control target
= control target key end

     0   :  { %s40_s0 = inlined_call_operand.vmem [shape: f32[4], index: 0, kind: input, shape index: {}]   ;;  %s41_s1 = inlined_call_operand.vmem [shape: f32[30,4], index: 1, kind: output, shape index: {}]  }
   0x1   :  { %v4_v0 = vld [vmem:[%s40_s0] ss:$0 sm:$0xff] }
   0x2   :  { %5 = vst [vmem:[%s41_s1] sm:$0xff] %v4_v0  ;;  %12 = vst [vmem:[%s41_s1 + $0x8] sm:$0xff] %v4_v0 }
   0x3   :  { %13 = vst [vmem:[%s41_s1 + $0x10] sm:$0xff] %v4_v0  ;;  %14 = vst [vmem:[%s41_s1 + $0x18] sm:$0xff] %v4_v0 }

// kernel: tile.23
= control target key start
LH: loop header
LB: loop body
LE: loop exit
PB: predicated region body
PF: predicated region fallthrough
CT: control target
= control target key end

     0   :  { %s243_s10 = smov 116   ;;  %s244_s11 = smov 108   ;;  %vm3_vm0 = vcmask 31744   ;;  %vm9_vm1 = vcmask 982944   ;;  %vm15_vm2 = vcmask 950144   ;;  %vm21_vm3 = vcmask 917344   ;;  %s375_s0 = inlined_call_operand.vmem [shape: f32[30,4], index: 0, kind: input, shape index: {}]   ;;  %s376_s1 = inlined_call_operand.vmem [shape: f32[1,120], index: 1, kind: output, shape index: {}]  }
   0x1   :  { %v185_v0 = vld [vmem:[%s375_s0 + $0x1d] sm:$0x1]   ;;  %v187_v1 = vld [vmem:[%s375_s0 + $0x1b] sm:$0x1]   ;;  %v186_v2 = vld [vmem:[%s375_s0 + $0x1c] sm:$0x1]  }
   0x2   :  { %7 = vrot.lane.b32.xlu0 %v185_v0, %s243_s10  ;;  %19 = vrot.lane.b32.xlu1 %v187_v1, %s244_s11  ;;  %v188_v3 = vld [vmem:[%s375_s0 + $0x1a] sm:$0x1]   ;;  %s245_s16 = smov 112   ;;  %s246_s17 = smov 104   ;;  %v189_v4 = vld [vmem:[%s375_s0 + $0x19] sm:$0x1]  }
   0x3   :  { %v190_v5 = vld [vmem:[%s375_s0 + $0x18] sm:$0x1]   ;;  %s247_s22 = smov 100   ;;  %s248_s23 = smov 96   ;;  %v191_v6 = vld [vmem:[%s375_s0 + $0x17] sm:$0x1]  }
   0x4   :  { %v192_v7 = vld [vmem:[%s375_s0 + $0x16] sm:$0x1]   ;;  %s249_s28 = smov 92   ;;  %s250_s29 = smov 88   ;;  %v193_v8 = vld [vmem:[%s375_s0 + $0x15] sm:$0x1]  }
   0x5   :  { %v194_v9 = vld [vmem:[%s375_s0 + $0x14] sm:$0x1]   ;;  %v2_v10 = vld [vmem:[%s375_s0] sm:$0x1]   ;;  %s251_s7 = smov 84   ;;  %s252_s8 = smov 80  }
   0x6   :  { %13 = vrot.lane.b32.xlu0 %v186_v2, %s245_s16  ;;  %25 = vrot.lane.b32.xlu1 %v188_v3, %s246_s17  ;;  %4 = vst.msk [vmem:[#allocation0] sm:$0x1] %vm3_vm0, %v2_v10   ;;  %v195_v11 = vld [vmem:[%s375_s0 + $0x13] sm:$0x1]   ;;  %v196_v12 = vld [vmem:[%s375_s0 + $0x12] sm:$0x1]  }
   0x7   :  { %s253_s13 = smov 76   ;;  %s254_s14 = smov 72   ;;  %v197_v13 = vld [vmem:[%s375_s0 + $0x11] sm:$0x1]   ;;  %v198_v14 = vld [vmem:[%s375_s0 + $0x10] sm:$0x1]  }
   0x8   :  { %s255_s19 = smov 68   ;;  %s256_s20 = smov 64   ;;  %v199_v15 = vld [vmem:[%s375_s0 + $0xf] sm:$0x1]   ;;  %v200_v16 = vld [vmem:[%s375_s0 + $0xe] sm:$0x1]  }
   0x9   :  { %s257_s25 = smov 60   ;;  %s258_s26 = smov 56   ;;  %v201_v17 = vld [vmem:[%s375_s0 + $0xd] sm:$0x1]   ;;  %v202_v18 = vld [vmem:[%s375_s0 + $0xc] sm:$0x1]  }
   0xa   :  { %31 = vrot.lane.b32.xlu0 %v189_v4, %s247_s22  ;;  %37 = vrot.lane.b32.xlu1 %v190_v5, %s248_s23  ;;  %s259_s2 = smov 52   ;;  %s260_s3 = smov 48   ;;  %v203_v19 = vld [vmem:[%s375_s0 + $0xb] sm:$0x1]   ;;  %v204_v20 = vld [vmem:[%s375_s0 + $0xa] sm:$0x1]  }
   0xb   :  { %s262_s9 = smov 40   ;;  %v205_v21 = vld [vmem:[%s375_s0 + $0x9] sm:$0x1]   ;;  %v206_v22 = vld [vmem:[%s375_s0 + $0x8] sm:$0x1]   ;;  %s264_s15 = smov 32  }
   0xc   :  { %v207_v23 = vld [vmem:[%s375_s0 + $0x7] sm:$0x1]   ;;  %v208_v24 = vld [vmem:[%s375_s0 + $0x6] sm:$0x1]   ;;  %s266_s21 = smov 24   ;;  %s268_s27 = smov 16  }
   0xd   :  { %v209_v25 = vld [vmem:[%s375_s0 + $0x5] sm:$0x1]   ;;  %v210_v26 = vld [vmem:[%s375_s0 + $0x4] sm:$0x1]   ;;  %v211_v27 = vld [vmem:[%s375_s0 + $0x3] sm:$0x1]  }
   0xe   :  { %43 = vrot.lane.b32.xlu0 %v191_v6, %s249_s28  ;;  %49 = vrot.lane.b32.xlu1 %v192_v7, %s250_s29  ;;  %v212_v28 = vld [vmem:[%s375_s0 + $0x2] sm:$0x1]   ;;  %s270_s4 = smov 8   ;;  %v213_v29 = vld [vmem:[%s375_s0 + $0x1] sm:$0x1]   ;;  %s271_s0 = smov 4  }
   0xf   :  { %vm27_vm4 = vcmask 884544   ;;  %vm33_vm5 = vcmask 851744   ;;  %vm39_vm6 = vcmask 818944   ;;  %vm45_vm7 = vcmask 786144  }
  0x10   :  { %vm51_vm8 = vcmask 753344   ;;  %vm57_vm9 = vcmask 720544   ;;  %vm63_vm10 = vcmask 687744   ;;  %vm69_vm11 = vcmask 654944  }
  0x11   :  { %vm75_vm12 = vcmask 622144   ;;  %vm81_vm13 = vcmask 589344   ;;  %vm87_vm14 = vcmask 556544   ;;  %vm93_vm15 = vcmask 523744  }
  0x12   :  { %55 = vrot.lane.b32.xlu0 %v193_v8, %s251_s7  ;;  %61 = vrot.lane.b32.xlu1 %v194_v9, %s252_s8  ;;  %s261_s8 = smov 44   ;;  %vm99_vm0 = vcmask 490944  }
  0x16   :  { %67 = vrot.lane.b32.xlu0 %v195_v11, %s253_s13  ;;  %73 = vrot.lane.b32.xlu1 %v196_v12, %s254_s14  ;;  %s263_s14 = smov 36  }
  0x1a   :  { %79 = vrot.lane.b32.xlu0 %v197_v13, %s255_s19  ;;  %85 = vrot.lane.b32.xlu1 %v198_v14, %s256_s20  ;;  %s265_s20 = smov 28  }
  0x1e   :  { %91 = vrot.lane.b32.xlu0 %v199_v15, %s257_s25  ;;  %97 = vrot.lane.b32.xlu1 %v200_v16, %s258_s26  ;;  %s267_s26 = smov 20  }
  0x22   :  { %103 = vrot.lane.b32.xlu0 %v201_v17, %s259_s2  ;;  %109 = vrot.lane.b32.xlu1 %v202_v18, %s260_s3  ;;  %s269_s3 = smov 12  }
  0x26   :  { %115 = vrot.lane.b32.xlu0 %v203_v19, %s261_s8  ;;  %121 = vrot.lane.b32.xlu1 %v204_v20, %s262_s9 }
  0x2a   :  { %127 = vrot.lane.b32.xlu0 %v205_v21, %s263_s14  ;;  %133 = vrot.lane.b32.xlu1 %v206_v22, %s264_s15 }
  0x2e   :  { %139 = vrot.lane.b32.xlu0 %v207_v23, %s265_s20  ;;  %145 = vrot.lane.b32.xlu1 %v208_v24, %s266_s21 }
  0x32   :  { %151 = vrot.lane.b32.xlu0 %v209_v25, %s267_s26  ;;  %157 = vrot.lane.b32.xlu1 %v210_v26, %s268_s27 }
  0x36   :  { %163 = vrot.lane.b32.xlu0 %v211_v27, %s269_s3  ;;  %169 = vrot.lane.b32.xlu1 %v212_v28, %s270_s4 }
  0x3a   :  { %175 = vrot.lane.b32.xlu0 %v213_v29, %s271_s0 }
  0x74   :  { %v8_v30 = vpop.permute.xlu0 %7   ;;  %v20_v31 = vpop.permute.xlu1 %19  }
  0x75   :  { %10 = vst.msk [vmem:[#allocation0] sm:$0x1] %vm9_vm1, %v8_v30   ;;  %vm105_vm1 = vcmask 458144  }
  0x78   :  { %v14_v32 = vpop.permute.xlu0 %13   ;;  %v26_v33 = vpop.permute.xlu1 %25  }
  0x79   :  { %16 = vst.msk [vmem:[#allocation0] sm:$0x1] %vm15_vm2, %v14_v32   ;;  %vm111_vm2 = vcmask 425344  }
  0x7a   :  { %22 = vst.msk [vmem:[#allocation0] sm:$0x1] %vm21_vm3, %v20_v31   ;;  %vm117_vm3 = vcmask 392544  }
  0x7b   :  { %28 = vst.msk [vmem:[#allocation0] sm:$0x1] %vm27_vm4, %v26_v33   ;;  %vm123_vm4 = vcmask 359744  }
  0x7c   :  { %v32_v34 = vpop.permute.xlu0 %31   ;;  %v38_v35 = vpop.permute.xlu1 %37  }
  0x7d   :  { %34 = vst.msk [vmem:[#allocation0] sm:$0x1] %vm33_vm5, %v32_v34   ;;  %vm129_vm5 = vcmask 326944  }
  0x7e   :  { %40 = vst.msk [vmem:[#allocation0] sm:$0x1] %vm39_vm6, %v38_v35   ;;  %vm135_vm6 = vcmask 294144  }
  0x80   :  { %v44_v36 = vpop.permute.xlu0 %43   ;;  %v50_v37 = vpop.permute.xlu1 %49  }
  0x81   :  { %46 = vst.msk [vmem:[#allocation0] sm:$0x1] %vm45_vm7, %v44_v36   ;;  %vm141_vm7 = vcmask 261344  }
  0x82   :  { %52 = vst.msk [vmem:[#allocation0] sm:$0x1] %vm51_vm8, %v50_v37   ;;  %vm147_vm8 = vcmask 228544  }
  0x84   :  { %v56_v38 = vpop.permute.xlu0 %55   ;;  %v62_v39 = vpop.permute.xlu1 %61  }
  0x85   :  { %58 = vst.msk [vmem:[#allocation0] sm:$0x1] %vm57_vm9, %v56_v38   ;;  %vm153_vm9 = vcmask 195744  }
  0x86   :  { %64 = vst.msk [vmem:[#allocation0] sm:$0x1] %vm63_vm10, %v62_v39   ;;  %vm159_vm10 = vcmask 162944  }
  0x88   :  { %v68_v40 = vpop.permute.xlu0 %67   ;;  %v74_v41 = vpop.permute.xlu1 %73  }
  0x89   :  { %70 = vst.msk [vmem:[#allocation0] sm:$0x1] %vm69_vm11, %v68_v40   ;;  %vm165_vm11 = vcmask 130144  }
  0x8a   :  { %76 = vst.msk [vmem:[#allocation0] sm:$0x1] %vm75_vm12, %v74_v41   ;;  %vm171_vm12 = vcmask 97344  }
  0x8c   :  { %v80_v42 = vpop.permute.xlu0 %79   ;;  %v86_v43 = vpop.permute.xlu1 %85  }
  0x8d   :  { %82 = vst.msk [vmem:[#allocation0] sm:$0x1] %vm81_vm13, %v80_v42   ;;  %vm177_vm13 = vcmask 64544  }
  0x8e   :  { %88 = vst.msk [vmem:[#allocation0] sm:$0x1] %vm87_vm14, %v86_v43  }
  0x90   :  { %v92_v44 = vpop.permute.xlu0 %91   ;;  %v98_v45 = vpop.permute.xlu1 %97  }
  0x91   :  { %94 = vst.msk [vmem:[#allocation0] sm:$0x1] %vm93_vm15, %v92_v44  }
  0x92   :  { %100 = vst.msk [vmem:[#allocation0] sm:$0x1] %vm99_vm0, %v98_v45  }
  0x94   :  { %v104_v46 = vpop.permute.xlu0 %103   ;;  %v110_v47 = vpop.permute.xlu1 %109  }
  0x95   :  { %106 = vst.msk [vmem:[#allocation0] sm:$0x1] %vm105_vm1, %v104_v46  }
  0x96   :  { %112 = vst.msk [vmem:[#allocation0] sm:$0x1] %vm111_vm2, %v110_v47  }
  0x98   :  { %v116_v48 = vpop.permute.xlu0 %115   ;;  %v122_v49 = vpop.permute.xlu1 %121  }
  0x99   :  { %118 = vst.msk [vmem:[#allocation0] sm:$0x1] %vm117_vm3, %v116_v48  }
  0x9a   :  { %124 = vst.msk [vmem:[#allocation0] sm:$0x1] %vm123_vm4, %v122_v49  }
  0x9c   :  { %v128_v50 = vpop.permute.xlu0 %127   ;;  %v134_v51 = vpop.permute.xlu1 %133  }
  0x9d   :  { %130 = vst.msk [vmem:[#allocation0] sm:$0x1] %vm129_vm5, %v128_v50  }
  0x9e   :  { %136 = vst.msk [vmem:[#allocation0] sm:$0x1] %vm135_vm6, %v134_v51  }
  0xa0   :  { %v140_v52 = vpop.permute.xlu0 %139   ;;  %v146_v53 = vpop.permute.xlu1 %145  }
  0xa1   :  { %142 = vst.msk [vmem:[#allocation0] sm:$0x1] %vm141_vm7, %v140_v52  }
  0xa2   :  { %148 = vst.msk [vmem:[#allocation0] sm:$0x1] %vm147_vm8, %v146_v53  }
  0xa4   :  { %v152_v54 = vpop.permute.xlu0 %151   ;;  %v158_v55 = vpop.permute.xlu1 %157  }
  0xa5   :  { %154 = vst.msk [vmem:[#allocation0] sm:$0x1] %vm153_vm9, %v152_v54  }
  0xa6   :  { %160 = vst.msk [vmem:[#allocation0] sm:$0x1] %vm159_vm10, %v158_v55  }
  0xa8   :  { %v164_v56 = vpop.permute.xlu0 %163   ;;  %v170_v57 = vpop.permute.xlu1 %169  }
  0xa9   :  { %166 = vst.msk [vmem:[#allocation0] sm:$0x1] %vm165_vm11, %v164_v56  }
  0xaa   :  { %172 = vst.msk [vmem:[#allocation0] sm:$0x1] %vm171_vm12, %v170_v57  }
  0xac   :  { %v176_v58 = vpop.permute.xlu0 %175  }
  0xad   :  { %178 = vst.msk [vmem:[#allocation0] sm:$0x1] %vm177_vm13, %v176_v58  }
  0xb4   :  { %v182_v59 = vld [vmem:[#allocation0] sm:$0x1] }
  0xb5   :  { %184 = vst [vmem:[%s376_s1] sm:$0x1] %v182_v59 }

// kernel: tile.30
= control target key start
LH: loop header
LB: loop body
LE: loop exit
PB: predicated region body
PF: predicated region fallthrough
CT: control target
= control target key end

     0   :  { %s28_s0 = inlined_call_operand.vmem [shape: f32[8], index: 0, kind: input, shape index: {}]   ;;  %s29_s1 = inlined_call_operand.vmem [shape: f32[12,8], index: 1, kind: output, shape index: {}]  }
   0x1   :  { %v4_v0 = vld [vmem:[%s28_s0] ss:$0 sm:$0xff] }
   0x2   :  { %5 = vst [vmem:[%s29_s1] sm:$0xff] %v4_v0  ;;  %8 = vst [vmem:[%s29_s1 + $0x8] sm:$0xff] %v4_v0 }

// kernel: tile.31
= control target key start
LH: loop header
LB: loop body
LE: loop exit
PB: predicated region body
PF: predicated region fallthrough
CT: control target
= control target key end

     0   :  { %s99_s10 = smov 88   ;;  %s100_s11 = smov 72   ;;  %vm3_vm0 = vcmask 64512   ;;  %vm9_vm1 = vcmask 786112   ;;  %vm15_vm2 = vcmask 720512   ;;  %vm21_vm3 = vcmask 654912   ;;  %s159_s0 = inlined_call_operand.vmem [shape: f32[12,8], index: 0, kind: input, shape index: {}]   ;;  %s160_s1 = inlined_call_operand.vmem [shape: f32[1,96], index: 1, kind: output, shape index: {}]  }
   0x1   :  { %v77_v0 = vld [vmem:[%s159_s0 + $0xb] sm:$0x1]   ;;  %v79_v1 = vld [vmem:[%s159_s0 + $0x9] sm:$0x1]   ;;  %v78_v2 = vld [vmem:[%s159_s0 + $0xa] sm:$0x1]  }
   0x2   :  { %7 = vrot.lane.b32.xlu0 %v77_v0, %s99_s10  ;;  %19 = vrot.lane.b32.xlu1 %v79_v1, %s100_s11  ;;  %v80_v3 = vld [vmem:[%s159_s0 + $0x8] sm:$0x1]   ;;  %s101_s16 = smov 80   ;;  %s102_s17 = smov 64   ;;  %v81_v4 = vld [vmem:[%s159_s0 + $0x7] sm:$0x1]  }
   0x3   :  { %v2_v5 = vld [vmem:[%s159_s0] sm:$0x1]   ;;  %v82_v6 = vld [vmem:[%s159_s0 + $0x6] sm:$0x1]   ;;  %s103_s24 = smov 56   ;;  %s104_s25 = smov 48  }
   0x4   :  { %4 = vst.msk [vmem:[#allocation0] sm:$0x1] %vm3_vm0, %v2_v5   ;;  %v83_v7 = vld [vmem:[%s159_s0 + $0x5] sm:$0x1]   ;;  %v84_v8 = vld [vmem:[%s159_s0 + $0x4] sm:$0x1]  }
   0x5   :  { %s105_s30 = smov 40   ;;  %s106_s2 = smov 32   ;;  %v85_v9 = vld [vmem:[%s159_s0 + $0x3] sm:$0x1]   ;;  %v86_v10 = vld [vmem:[%s159_s0 + $0x2] sm:$0x1]  }
   0x6   :  { %13 = vrot.lane.b32.xlu0 %v78_v2, %s101_s16  ;;  %25 = vrot.lane.b32.xlu1 %v80_v3, %s102_s17  ;;  %s107_s7 = smov 24   ;;  %s108_s8 = smov 16   ;;  %v87_v11 = vld [vmem:[%s159_s0 + $0x1] sm:$0x1]   ;;  %vm27_vm4 = vcmask 589312   ;;  %vm33_vm5 = vcmask 523712  }
   0x7   :  { %s109_s0 = smov 8   ;;  %vm39_vm6 = vcmask 458112   ;;  %vm45_vm7 = vcmask 392512   ;;  %vm51_vm8 = vcmask 326912   ;;  %vm57_vm9 = vcmask 261312  }
   0x8   :  { %vm63_vm10 = vcmask 195712   ;;  %vm69_vm11 = vcmask 130112  }
   0xa   :  { %31 = vrot.lane.b32.xlu0 %v81_v4, %s103_s24  ;;  %37 = vrot.lane.b32.xlu1 %v82_v6, %s104_s25 }
   0xe   :  { %43 = vrot.lane.b32.xlu0 %v83_v7, %s105_s30  ;;  %49 = vrot.lane.b32.xlu1 %v84_v8, %s106_s2 }
  0x12   :  { %55 = vrot.lane.b32.xlu0 %v85_v9, %s107_s7  ;;  %61 = vrot.lane.b32.xlu1 %v86_v10, %s108_s8 }
  0x16   :  { %67 = vrot.lane.b32.xlu0 %v87_v11, %s109_s0 }
  0x74   :  { %v8_v12 = vpop.permute.xlu0 %7   ;;  %v20_v13 = vpop.permute.xlu1 %19  }
  0x75   :  { %10 = vst.msk [vmem:[#allocation0] sm:$0x1] %vm9_vm1, %v8_v12  }
  0x78   :  { %v14_v14 = vpop.permute.xlu0 %13   ;;  %v26_v15 = vpop.permute.xlu1 %25  }
  0x79   :  { %16 = vst.msk [vmem:[#allocation0] sm:$0x1] %vm15_vm2, %v14_v14  }
  0x7a   :  { %22 = vst.msk [vmem:[#allocation0] sm:$0x1] %vm21_vm3, %v20_v13  }
  0x7b   :  { %28 = vst.msk [vmem:[#allocation0] sm:$0x1] %vm27_vm4, %v26_v15  }
  0x7c   :  { %v32_v16 = vpop.permute.xlu0 %31   ;;  %v38_v17 = vpop.permute.xlu1 %37  }
  0x7d   :  { %34 = vst.msk [vmem:[#allocation0] sm:$0x1] %vm33_vm5, %v32_v16  }
  0x7e   :  { %40 = vst.msk [vmem:[#allocation0] sm:$0x1] %vm39_vm6, %v38_v17  }
  0x80   :  { %v44_v18 = vpop.permute.xlu0 %43   ;;  %v50_v19 = vpop.permute.xlu1 %49  }
  0x81   :  { %46 = vst.msk [vmem:[#allocation0] sm:$0x1] %vm45_vm7, %v44_v18  }
  0x82   :  { %52 = vst.msk [vmem:[#allocation0] sm:$0x1] %vm51_vm8, %v50_v19  }
  0x84   :  { %v56_v20 = vpop.permute.xlu0 %55   ;;  %v62_v21 = vpop.permute.xlu1 %61  }
  0x85   :  { %58 = vst.msk [vmem:[#allocation0] sm:$0x1] %vm57_vm9, %v56_v20  }
  0x86   :  { %64 = vst.msk [vmem:[#allocation0] sm:$0x1] %vm63_vm10, %v62_v21  }
  0x88   :  { %v68_v22 = vpop.permute.xlu0 %67  }
  0x89   :  { %70 = vst.msk [vmem:[#allocation0] sm:$0x1] %vm69_vm11, %v68_v22  }
  0x90   :  { %v74_v23 = vld [vmem:[#allocation0] sm:$0x1] }
  0x91   :  { %76 = vst [vmem:[%s160_s1] sm:$0x1] %v74_v23 }

// kernel: tile.34
= control target key start
LH: loop header
LB: loop body
LE: loop exit
PB: predicated region body
PF: predicated region fallthrough
CT: control target
= control target key end

     0   :  { %s28_s0 = inlined_call_operand.vmem [shape: f32[8], index: 0, kind: input, shape index: {}]   ;;  %s29_s1 = inlined_call_operand.vmem [shape: f32[10,8], index: 1, kind: output, shape index: {}]  }
   0x1   :  { %v4_v0 = vld [vmem:[%s28_s0] ss:$0 sm:$0xff] }
   0x2   :  { %5 = vst [vmem:[%s29_s1] sm:$0xff] %v4_v0  ;;  %8 = vst [vmem:[%s29_s1 + $0x8] sm:$0xff] %v4_v0 }

// kernel: tile.35
= control target key start
LH: loop header
LB: loop body
LE: loop exit
PB: predicated region body
PF: predicated region fallthrough
CT: control target
= control target key end

     0   :  { %s83_s10 = smov 72   ;;  %s84_s11 = smov 56   ;;  %vm3_vm0 = vcmask 64512   ;;  %vm9_vm1 = vcmask 654912   ;;  %vm15_vm2 = vcmask 589312   ;;  %vm21_vm3 = vcmask 523712   ;;  %s135_s0 = inlined_call_operand.vmem [shape: f32[10,8], index: 0, kind: input, shape index: {}]   ;;  %s136_s1 = inlined_call_operand.vmem [shape: f32[1,80], index: 1, kind: output, shape index: {}]  }
   0x1   :  { %v65_v0 = vld [vmem:[%s135_s0 + $0x9] sm:$0x1]   ;;  %v67_v1 = vld [vmem:[%s135_s0 + $0x7] sm:$0x1]   ;;  %v66_v2 = vld [vmem:[%s135_s0 + $0x8] sm:$0x1]  }
   0x2   :  { %7 = vrot.lane.b32.xlu0 %v65_v0, %s83_s10  ;;  %19 = vrot.lane.b32.xlu1 %v67_v1, %s84_s11  ;;  %v68_v3 = vld [vmem:[%s135_s0 + $0x6] sm:$0x1]   ;;  %v2_v4 = vld [vmem:[%s135_s0] sm:$0x1]   ;;  %s85_s18 = smov 64   ;;  %s86_s19 = smov 48  }
   0x3   :  { %v69_v5 = vld [vmem:[%s135_s0 + $0x5] sm:$0x1]   ;;  %v70_v6 = vld [vmem:[%s135_s0 + $0x4] sm:$0x1]   ;;  %4 = vst.msk [vmem:[#allocation0] sm:$0x1] %vm3_vm0, %v2_v4  }
   0x4   :  { %s87_s24 = smov 40   ;;  %s88_s25 = smov 32   ;;  %v71_v7 = vld [vmem:[%s135_s0 + $0x3] sm:$0x1]   ;;  %v72_v8 = vld [vmem:[%s135_s0 + $0x2] sm:$0x1]  }
   0x5   :  { %s89_s30 = smov 24   ;;  %s90_s2 = smov 16   ;;  %v73_v9 = vld [vmem:[%s135_s0 + $0x1] sm:$0x1]   ;;  %vm27_vm4 = vcmask 458112   ;;  %vm33_vm5 = vcmask 392512  }
   0x6   :  { %13 = vrot.lane.b32.xlu0 %v66_v2, %s85_s18  ;;  %25 = vrot.lane.b32.xlu1 %v68_v3, %s86_s19  ;;  %s91_s0 = smov 8   ;;  %vm39_vm6 = vcmask 326912   ;;  %vm45_vm7 = vcmask 261312   ;;  %vm51_vm8 = vcmask 195712   ;;  %vm57_vm9 = vcmask 130112  }
   0xa   :  { %31 = vrot.lane.b32.xlu0 %v69_v5, %s87_s24  ;;  %37 = vrot.lane.b32.xlu1 %v70_v6, %s88_s25 }
   0xe   :  { %43 = vrot.lane.b32.xlu0 %v71_v7, %s89_s30  ;;  %49 = vrot.lane.b32.xlu1 %v72_v8, %s90_s2 }
  0x12   :  { %55 = vrot.lane.b32.xlu0 %v73_v9, %s91_s0 }
  0x74   :  { %v8_v10 = vpop.permute.xlu0 %7   ;;  %v20_v11 = vpop.permute.xlu1 %19  }
  0x75   :  { %10 = vst.msk [vmem:[#allocation0] sm:$0x1] %vm9_vm1, %v8_v10  }
  0x78   :  { %v14_v12 = vpop.permute.xlu0 %13   ;;  %v26_v13 = vpop.permute.xlu1 %25  }
  0x79   :  { %16 = vst.msk [vmem:[#allocation0] sm:$0x1] %vm15_vm2, %v14_v12  }
  0x7a   :  { %22 = vst.msk [vmem:[#allocation0] sm:$0x1] %vm21_vm3, %v20_v11  }
  0x7b   :  { %28 = vst.msk [vmem:[#allocation0] sm:$0x1] %vm27_vm4, %v26_v13  }
  0x7c   :  { %v32_v14 = vpop.permute.xlu0 %31   ;;  %v38_v15 = vpop.permute.xlu1 %37  }
  0x7d   :  { %34 = vst.msk [vmem:[#allocation0] sm:$0x1] %vm33_vm5, %v32_v14  }
  0x7e   :  { %40 = vst.msk [vmem:[#allocation0] sm:$0x1] %vm39_vm6, %v38_v15  }
  0x80   :  { %v44_v16 = vpop.permute.xlu0 %43   ;;  %v50_v17 = vpop.permute.xlu1 %49  }
  0x81   :  { %46 = vst.msk [vmem:[#allocation0] sm:$0x1] %vm45_vm7, %v44_v16  }
  0x82   :  { %52 = vst.msk [vmem:[#allocation0] sm:$0x1] %vm51_vm8, %v50_v17  }
  0x84   :  { %v56_v18 = vpop.permute.xlu0 %55  }
  0x85   :  { %58 = vst.msk [vmem:[#allocation0] sm:$0x1] %vm57_vm9, %v56_v18  }
  0x8c   :  { %v62_v19 = vld [vmem:[#allocation0] sm:$0x1] }
  0x8d   :  { %64 = vst [vmem:[%s136_s1] sm:$0x1] %v62_v19 }

// kernel: tile.38
= control target key start
LH: loop header
LB: loop body
LE: loop exit
PB: predicated region body
PF: predicated region fallthrough
CT: control target
= control target key end

     0   :  { %s22_s0 = inlined_call_operand.vmem [shape: f32[4], index: 0, kind: input, shape index: {}]   ;;  %s23_s1 = inlined_call_operand.vmem [shape: f32[4,4], index: 1, kind: output, shape index: {}]  }
   0x1   :  { %v4_v0 = vld [vmem:[%s22_s0] ss:$0 sm:$0xff] }
   0x2   :  { %5 = vst [vmem:[%s23_s1] sm:$0xf] %v4_v0 }

// kernel: tile.39
= control target key start
LH: loop header
LB: loop body
LE: loop exit
PB: predicated region body
PF: predicated region fallthrough
CT: control target
= control target key end

     0   :  { %vm7_vm0 = vcmask 31744   ;;  %s37_s8 = smov 4   ;;  %s38_s9 = smov 8   ;;  %vm13_vm1 = vcmask 130144   ;;  %vm19_vm2 = vcmask 97344   ;;  %vm25_vm3 = vcmask 64544   ;;  %s55_s0 = inlined_call_operand.vmem [shape: f32[4,4], index: 0, kind: input, shape index: {}]   ;;  %s56_s1 = inlined_call_operand.vmem [shape: f32[1,16], index: 1, kind: output, shape index: {}]  }
   0x1   :  { %v4_v0 = vld [vmem:[%s55_s0] sm:$0xf]  ;;  %s36_s0 = smov 12  }
   0x2   :  { %5 = vst [vmem:[#allocation1] sm:$0xf] %v4_v0 }
   0x9   :  { %v10_v1 = vld [vmem:[#allocation1 + $0x3] sm:$0x1]   ;;  %v22_v2 = vld [vmem:[#allocation1 + $0x1] sm:$0x1]   ;;  %v6_v3 = vld [vmem:[#allocation1] sm:$0x1]  }
   0xa   :  { %11 = vrot.lane.b32.xlu0 %v10_v1, %s36_s0  ;;  %23 = vrot.lane.b32.xlu1 %v22_v2, %s37_s8  ;;  %v16_v4 = vld [vmem:[#allocation1 + $0x2] sm:$0x1]   ;;  %8 = vst.msk [vmem:[#allocation0] sm:$0x1] %vm7_vm0, %v6_v3  }
   0xe   :  { %17 = vrot.lane.b32.xlu0 %v16_v4, %s38_s9 }
  0x7c   :  { %v12_v5 = vpop.permute.xlu0 %11   ;;  %v24_v6 = vpop.permute.xlu1 %23  }
  0x7d   :  { %14 = vst.msk [vmem:[#allocation0] sm:$0x1] %vm13_vm1, %v12_v5  }
  0x80   :  { %v18_v7 = vpop.permute.xlu0 %17  }
  0x81   :  { %20 = vst.msk [vmem:[#allocation0] sm:$0x1] %vm19_vm2, %v18_v7  }
  0x82   :  { %26 = vst.msk [vmem:[#allocation0] sm:$0x1] %vm25_vm3, %v24_v6  }
  0x89   :  { %v30_v8 = vld [vmem:[#allocation0] sm:$0x1] }
  0x8a   :  { %32 = vst [vmem:[%s56_s1] sm:$0x1] %v30_v8 }

// kernel: _lambda_.1
= control target key start
LH: loop header
LB: loop body
LE: loop exit
PB: predicated region body
PF: predicated region fallthrough
CT: control target
= control target key end

     0   :  { %s3274_s17 = smov 0   ;;  %s4292_s0 = inlined_call_operand.vmem [shape: f32[2,32,32], index: 0, kind: input, shape index: {}]   ;;  %s4293_s1 = inlined_call_operand.vmem [shape: f32[3,32,120], index: 1, kind: input, shape index: {}]   ;;  %s4294_s2 = inlined_call_operand.vmem [shape: f32[1,120], index: 2, kind: input, shape index: {}]   ;;  %s4295_s3 = inlined_call_operand.vmem [shape: f32[3,120,224], index: 3, kind: input, shape index: {}]   ;;  %s4296_s4 = inlined_call_operand.vmem [shape: f32[1,224], index: 4, kind: input, shape index: {}]   ;;  %s4297_s5 = inlined_call_operand.vmem [shape: f32[3,216,96], index: 5, kind: input, shape index: {}]   ;;  %s4298_s6 = inlined_call_operand.vmem [shape: f32[1,96], index: 6, kind: input, shape index: {}]   ;;  %s4299_s7 = inlined_call_operand.vmem [shape: f32[3,96,80], index: 7, kind: input, shape index: {}]   ;;  %s4300_s8 = inlined_call_operand.vmem [shape: f32[1,80], index: 8, kind: input, shape index: {}]   ;;  %s4301_s9 = inlined_call_operand.vmem [shape: f32[2,72,16], index: 9, kind: input, shape index: {}]   ;;  %s4302_s10 = inlined_call_operand.vmem [shape: f32[1,16], index: 10, kind: input, shape index: {}]   ;;  %s4303_s11 = inlined_call_operand.vmem [shape: f32[2,4,16], index: 11, kind: output, shape index: {}]  }
   0x1 LB: > { %s2323_s18 = sadd.s32 4294967295, %s3207_s17   ;;  %p2327_p0 = scmp.ge.s32.totalorder %s3207_s17, 1  ;;  %s3207_s17 = sphi %s3274_s17, %s21_s17  }
   0x2   : > { %p337_p1 = scmp.lt.s32.totalorder %s3207_s17, 3 }
   0x4   : > { %p338_p2 = pnand %p2327_p0, %p337_p1 }
   0x5   : > { %v389_v0 = vld [vmem:[%s4293_s1] sm:$0xff] (!%p338_p2)  ;;  %v390_v1 = vld [vmem:[%s4293_s1 + $0x8] sm:$0xff] (!%p338_p2)  ;;  %v391_v2 = vld [vmem:[%s4293_s1 + $0x10] sm:$0xff] (!%p338_p2)  ;;  %p376_p3 = scmp.lt.s32.totalorder (!%p338_p2), %s2323_s18, 1  ;;  %vm410_vm0 = vcmask (!%p338_p2), 261120   ;;  %vm402_vm1 = vcmask (!%p338_p2), 1046528  }
   0x6   : > { %341 = sbr.rel (%p338_p2) target bundleno = 2020 (0x7e4), region = 64  ;;  %v2808_v3 = vpack.c.bf16 (!%p338_p2), %v390_v1, %v389_v0  ;;  %v392_v4 = vld [vmem:[%s4293_s1 + $0x18] sm:$0xff] (!%p338_p2)  ;;  %v2331_v5 = vld [vmem:[%s4293_s1 + $0x20] sm:$0xff] (!%p338_p2)  ;;  %v2332_v6 = vld [vmem:[%s4293_s1 + $0x28] sm:$0xff] (!%p338_p2)  ;;  %vm602_vm2 = vcmask (!%p338_p2), 1045504   ;;  %vm794_vm3 = vcmask (!%p338_p2), 982016  }
   0x7   : > { %v2812_v7 = vpack.c.bf16 (!%p338_p2), %v392_v4, %v391_v2  ;;  %v2800_v8 = vpack.c.bf16 (!%p338_p2), %v2332_v6, %v2331_v5  ;;  %v2343_v9 = vld [vmem:[%s4293_s1 + $0x40] sm:$0xff] (!%p338_p2)  ;;  %v2344_v10 = vld [vmem:[%s4293_s1 + $0x48] sm:$0xff] (!%p338_p2)  ;;  %v2333_v11 = vld [vmem:[%s4293_s1 + $0x30] sm:$0xff] (!%p338_p2)  ;;  %s3210_s27 = smov (!%p338_p2), 120   ;;  %vm1262_vm4 = vcmask (!%p338_p2), 1042432   ;;  %vm3212_vm5 = vmmov (!%p338_p2), 1  }
   0x8   : > { %2809 = vmatprep.subr.bf16.mxu0 (!%p338_p2), %v2808_v3  ;;  %v2334_v12 = vld [vmem:[%s4293_s1 + $0x38] sm:$0xff] (!%p338_p2)  ;;  %v2355_v15 = vld [vmem:[%s4295_s3 + $0x108] sm:$0xff] (!%p338_p2)  ;;  %v2816_v16 = vpack.c.bf16 (!%p338_p2), %v2344_v10, %v2343_v9  ;;  %v2345_v17 = vld [vmem:[%s4293_s1 + $0x50] sm:$0xff] (!%p338_p2)  ;;  %vm1255_vm8 = vcmask (!%p338_p2), 220160   ;;  %vm1413_vm10 = vcmask (!%p338_p2), 719872   ;;  %vm1730_vm11 = vcmask (!%p338_p2), 785408  }
   0x9   : > { %2811 = vmatpush3.bf16.msra.mxu0 (!%p338_p2), %v2808_v3  ;;  %2801 = vmatprep.subr.bf16.mxu1 (!%p338_p2), %v2800_v8  ;;  %v2804_v13 = vpack.c.bf16 (!%p338_p2), %v2334_v12, %v2333_v11  ;;  %v2353_v14 = vld [vmem:[%s4295_s3 + $0xf8] sm:$0xff] (!%p338_p2)  ;;  %v2352_v22 = vld [vmem:[%s4295_s3 + $0xf0] sm:$0xff] (!%p338_p2)  ;;  %v2354_v27 = vld [vmem:[%s4295_s3 + $0x100] sm:$0xff] (!%p338_p2)  ;;  %vm3213_vm12 = vmmov (!%p338_p2), 0   ;;  %vm2019_vm13 = vcmask (!%p338_p2), 1040384   ;;  %vm2016_vm15 = vcmask (!%p338_p2), 72704  }
   0xa   : > { %2813 = vmatprep.subr.bf16.mxu0 (!%p338_p2), %v2812_v7  ;;  %2803 = vmatpush3.bf16.msra.mxu1 (!%p338_p2), %v2800_v8  ;;  %v2346_v18 = vld [vmem:[%s4293_s1 + $0x58] sm:$0xff] (!%p338_p2)  ;;  %v2824_v21 = vpack.c.bf16 (!%p338_p2), %v2355_v15, %v2353_v14  ;;  %v2359_v31 = vld [vmem:[%s4295_s3 + $0x128] sm:$0xff] (!%p338_p2)  ;;  %v2826_v37 = vpack.c.bf16 (!%p338_p2), %v2354_v27, %v2352_v22  ;;  %v2356_v40 = vld [vmem:[%s4295_s3 + $0x110] sm:$0xff] (!%p338_p2) }
   0xb   : > { %2805 = vmatprep.subr.bf16.mxu1 (!%p338_p2), %v2804_v13  ;;  %v2357_v30 = vld [vmem:[%s4295_s3 + $0x118] sm:$0xff] (!%p338_p2)  ;;  %v2820_v34 = vpack.c.bf16 (!%p338_p2), %v2346_v18, %v2345_v17  ;;  %v2358_v41 = vld [vmem:[%s4295_s3 + $0x120] sm:$0xff] (!%p338_p2)  ;;  %v2363_v44 = vld [vmem:[%s4295_s3 + $0x148] sm:$0xff] (!%p338_p2) }
   0xc   : > { %v2828_v39 = vpack.c.bf16 (!%p338_p2), %v2359_v31, %v2357_v30  ;;  %v2361_v43 = vld [vmem:[%s4295_s3 + $0x138] sm:$0xff] (!%p338_p2)  ;;  %v2830_v47 = vpack.c.bf16 (!%p338_p2), %v2358_v41, %v2356_v40  ;;  %v2360_v49 = vld [vmem:[%s4295_s3 + $0x130] sm:$0xff] (!%p338_p2)  ;;  %v2362_v50 = vld [vmem:[%s4295_s3 + $0x140] sm:$0xff] (!%p338_p2) }
   0xd   : > { %s4305_s18 = smov (!%p376_p3, %s2323_s18), 1  ;;  %2815 = vmatpush3.bf16.msra.mxu0 %v2812_v7  ;;  %v2832_v48 = vpack.c.bf16 %v2363_v44, %v2361_v43  ;;  %v2365_v52 = vld [vmem:[%s4295_s3 + $0x158] sm:$0xff]  ;;  %v2367_v53 = vld [vmem:[%s4295_s3 + $0x168] sm:$0xff]  ;;  %v2834_v55 = vpack.c.bf16 %v2362_v50, %v2360_v49  ;;  %v2364_v57 = vld [vmem:[%s4295_s3 + $0x150] sm:$0xff] }
   0xe   : > { %s2538_s22 = sshll.u32 %s4305_s18, 5  ;;  %2817 = vmatprep.subr.bf16.mxu0 %v2816_v16  ;;  %2807 = vmatpush3.bf16.msra.mxu1 %v2804_v13  ;;  %v2836_v56 = vpack.c.bf16 %v2367_v53, %v2365_v52  ;;  %v2366_v58 = vld [vmem:[%s4295_s3 + $0x160] sm:$0xff]  ;;  %v2369_v59 = vld [vmem:[%s4295_s3 + $0x178] sm:$0xff]  ;;  %v2371_v60 = vld [vmem:[%s4295_s3 + $0x188] sm:$0xff] }
   0xf   : > { %s380_s29 = scalar_lea.vmem %s4292_s0, %s2538_s22  ;;  %2825 = vmatprep.subr.bf16.mxu1 %v2824_v21  ;;  %v2838_v61 = vpack.c.bf16 %v2366_v58, %v2364_v57  ;;  %v2840_v62 = vpack.c.bf16 %v2371_v60, %v2369_v59  ;;  %v2368_v63 = vld [vmem:[%s4295_s3 + $0x170] sm:$0xff]  ;;  %v2370_v0 = vld [vmem:[%s4295_s3 + $0x180] sm:$0xff]  ;;  %v2373_v2 = vld [vmem:[%s4295_s3 + $0x198] sm:$0xff] }
  0x10   : > { %v385_v19 = vld [vmem:[%s380_s29] sm:$0xff]  ;;  %v387_v20 = vld [vmem:[%s380_s29 + $0x10] sm:$0xff]  ;;  %v386_v24 = vld [vmem:[%s380_s29 + $0x8] sm:$0xff]  ;;  %v2842_v1 = vpack.c.bf16 %v2370_v0, %v2368_v63 }
  0x11   : > { %v403_v23 = vrot.slane %v385_v19, 1  ;;  %2650 = vmatprep.mubr.msk.f32.mxu0 %vm410_vm0, %v385_v19  ;;  %v406_v25 = vrot.slane %v387_v20, 1  ;;  %v388_v26 = vld [vmem:[%s380_s29 + $0x18] sm:$0xff]  ;;  %v404_v29 = vrot.slane %v386_v24, 1  ;;  %v603_v32 = vrot.slane %v385_v19, 2  ;;  %v2375_v3 = vld [vmem:[%s4295_s3 + $0x1a8] sm:$0xff]  ;;  %vm2913_vm6 = vmpackc.low %vm1262_vm4, %vm3212_vm5 }
  0x12   : > { %v408_v28 = vrot.slane %v388_v26, 1  ;;  %v604_v33 = vrot.slane %v386_v24, 2  ;;  %2651 = vmatmul.mubr.msk.f32.vlgmr.msra.gmra.mrb[0].mxu0 %vm410_vm0, %v386_v24  ;;  %v606_v42 = vrot.slane %v387_v20, 2  ;;  %v608_v45 = vrot.slane %v388_v26, 2  ;;  %v2372_v5 = vld [vmem:[%s4295_s3 + $0x190] sm:$0xff]  ;;  %v2374_v6 = vld [vmem:[%s4295_s3 + $0x1a0] sm:$0xff]  ;;  %vm3109_vm14 = vmpackc.low %vm2019_vm13, %vm3212_vm5 }
  0x13   : > { %v405_v35 = vsel %vm402_vm1, %v403_v23, %v404_v29  ;;  %v407_v36 = vsel %vm402_vm1, %v404_v29, %v406_v25  ;;  %2819 = vmatpush3.bf16.msra.mxu0 %v2816_v16  ;;  %2653 = vmatprep.mubr.msk.f32.mxu0 %vm410_vm0, %v387_v20  ;;  %v2844_v4 = vpack.c.bf16 %v2375_v3, %v2373_v2  ;;  %v2377_v8 = vld [vmem:[%s4295_s3 + $0x1b8] sm:$0xff]  ;;  %v2379_v9 = vld [vmem:[%s4295_s3 + $0x1c8] sm:$0xff]  ;;  %v2376_v11 = vld [vmem:[%s4295_s3 + $0x1b0] sm:$0xff]  ;;  %v3209_v19 = vmov 0.0   ;;  %s2330_s29 = sshll.u32 %s4305_s18, 2 }
  0x14   : > { %2636 = vmatprep.mubr.msk.f32.mxu1 %vm410_vm0, %v405_v35  ;;  %v409_v38 = vsel %vm402_vm1, %v406_v25, %v408_v28  ;;  %2821 = vmatprep.subr.bf16.mxu0 %v2820_v34  ;;  %v605_v46 = vsel %vm602_vm2, %v603_v32, %v604_v33  ;;  %v607_v51 = vsel %vm602_vm2, %v604_v33, %v606_v42  ;;  %v2378_v12 = vld [vmem:[%s4295_s3 + $0x1c0] sm:$0xff]  ;;  %v2381_v14 = vld [vmem:[%s4295_s3 + $0x1d8] sm:$0xff]  ;;  %v723_v15 = vld [vmem:[%s4295_s3 + $0x8] sm:$0xff]  ;;  %s384_s13 = scalar_lea.vmem %s4303_s11, %s2330_s29 }
  0x15   : > { %2637 = vmatmul.mubr.msk.f32.vlgmr.msra.gmra.mrb[0].mxu1 %vm410_vm0, %v407_v36  ;;  %v609_v54 = vsel %vm602_vm2, %v606_v42, %v608_v45  ;;  %v2846_v7 = vpack.c.bf16 %v2374_v6, %v2372_v5  ;;  %v2848_v10 = vpack.c.bf16 %v2379_v9, %v2377_v8  ;;  %v2850_v13 = vpack.c.bf16 %v2378_v12, %v2376_v11  ;;  %v725_v16 = vld [vmem:[%s4295_s3 + $0x18] sm:$0xff]  ;;  %v2380_v17 = vld [vmem:[%s4295_s3 + $0x1d0] sm:$0xff]  ;;  %v2351_v25 = vld [vmem:[%s4294_s2] ss:$0 sm:$0xff] }
  0x16   : > { %2639 = vmatprep.mubr.msk.f32.mxu1 %vm410_vm0, %v409_v38  ;;  %2827 = vmatpush1.bf16.msra.mxu1 %v2826_v37  ;;  %v2852_v18 = vpack.c.bf16 %v725_v16, %v723_v15  ;;  %v722_v32 = vld [vmem:[%s4295_s3] sm:$0xff]  ;;  %v724_v33 = vld [vmem:[%s4295_s3 + $0x10] sm:$0xff]  ;;  %v729_v40 = vld [vmem:[%s4295_s3 + $0x38] sm:$0xff] }
  0x17   : > { %2654 = vmatmul.mubr.msk.f32.gmra.mrb[2].mxu0 %vm410_vm0, %v388_v26  ;;  %2829 = vmatprep.subr.bf16.mxu1 %v2828_v39  ;;  %v727_v39 = vld [vmem:[%s4295_s3 + $0x28] sm:$0xff]  ;;  %v2854_v44 = vpack.c.bf16 %v724_v33, %v722_v32  ;;  %v726_v50 = vld [vmem:[%s4295_s3 + $0x20] sm:$0xff]  ;;  %v732_v0 = vld [vmem:[%s4295_s3 + $0x50] sm:$0xff] }
  0x18   : > { %2823 = vmatpush3.bf16.msra.mxu0 %v2820_v34  ;;  %2664 = vmatprep.mubr.msk.f32.mxu0 %vm410_vm0, %v605_v46  ;;  %v2856_v49 = vpack.c.bf16 %v729_v40, %v727_v39  ;;  %v730_v63 = vld [vmem:[%s4295_s3 + $0x40] sm:$0xff]  ;;  %v735_v3 = vld [vmem:[%s4295_s3 + $0x68] sm:$0xff]  ;;  %v741_v12 = vld [vmem:[%s4295_s3 + $0x98] sm:$0xff] }
  0x19   : > { %2640 = vmatmul.mubr.msk.f32.gmra.mrb[2].mxu1 %vm410_vm0, %v408_v28  ;;  %v734_v9 = vld [vmem:[%s4295_s3 + $0x60] sm:$0xff]  ;;  %v739_v11 = vld [vmem:[%s4295_s3 + $0x88] sm:$0xff]  ;;  %v740_v16 = vld [vmem:[%s4295_s3 + $0x90] sm:$0xff] }
  0x1a   : > { %2831 = vmatpush1.bf16.msra.mxu1 %v2830_v47  ;;  %867 = vmatprep.mubr.f32.mxu1 %v3209_v19  ;;  %v738_v15 = vld [vmem:[%s4295_s3 + $0x80] sm:$0xff]  ;;  %v2391_v32 = vld [vmem:[%s4295_s3 + $0x1e8] sm:$0xff]  ;;  %v2393_v33 = vld [vmem:[%s4295_s3 + $0x1f8] sm:$0xff] }
  0x1b   : > { %2665 = vmatmul.mubr.msk.f32.vlgmr.msra.gmra.mrb[0].mxu0 %vm410_vm0, %v607_v51  ;;  %2833 = vmatprep.subr.bf16.mxu1 %v2832_v48  ;;  %v728_v51 = vld [vmem:[%s4295_s3 + $0x30] sm:$0xff]  ;;  %v2397_v39 = vld [vmem:[%s4295_s3 + $0x218] sm:$0xff]  ;;  %v750_v40 = vld [vmem:[%s4295_s3 + $0xe0] sm:$0xff] }
  0x1c   : > { %2667 = vmatprep.mubr.msk.f32.mxu0 %vm410_vm0, %v609_v54  ;;  %v731_v54 = vld [vmem:[%s4295_s3 + $0x48] sm:$0xff] }
  0x1e   : > { %2835 = vmatpush1.bf16.msra.mxu1 %v2834_v55  ;;  %v733_v55 = vld [vmem:[%s4295_s3 + $0x58] sm:$0xff] }
  0x1f   : > { %2668 = vmatmul.mubr.msk.f32.gmra.mrb[2].mxu0 %vm410_vm0, %v608_v45  ;;  %2837 = vmatprep.subr.bf16.mxu1 %v2836_v56  ;;  %vm2114_vm0 = vcmask 588800  }
  0x20   : > { %1333 = vmatprep.mubr.f32.mxu0 %v3209_v19 }
  0x22   : > { %2839 = vmatpush1.bf16.msra.mxu1 %v2838_v61  ;;  %v2858_v61 = vpack.c.bf16 %v728_v51, %v726_v50  ;;  %v2398_v51 = vld [vmem:[%s4295_s3 + $0x220] sm:$0xff] }
  0x23   : > { %2841 = vmatprep.subr.bf16.mxu1 %v2840_v62  ;;  %v2860_v62 = vpack.c.bf16 %v733_v55, %v731_v54  ;;  %v2403_v54 = vld [vmem:[%s4295_s3 + $0x248] sm:$0xff] }
  0x26   : > { %2843 = vmatpush1.bf16.msra.mxu1 %v2842_v1 }
  0x27   : > { %2845 = vmatprep.subr.bf16.mxu1 %v2844_v4  ;;  %v737_v4 = vld [vmem:[%s4295_s3 + $0x78] sm:$0xff] }
  0x28   : > { %v2864_v8 = vpack.c.bf16 %v737_v4, %v735_v3 }
  0x2a   : > { %2847 = vmatpush1.bf16.msra.mxu1 %v2846_v7  ;;  %v2862_v7 = vpack.c.bf16 %v732_v0, %v730_v63  ;;  %v2406_v0 = vld [vmem:[%s4295_s3 + $0x260] sm:$0xff] }
  0x2b   : > { %2849 = vmatprep.subr.bf16.mxu1 %v2848_v10  ;;  %v736_v10 = vld [vmem:[%s4295_s3 + $0x70] sm:$0xff] }
  0x2e   : > { %2851 = vmatpush1.bf16.msra.mxu1 %v2850_v13  ;;  %v2866_v13 = vpack.c.bf16 %v736_v10, %v734_v9  ;;  %v2415_v9 = vld [vmem:[%s4295_s3 + $0x2a8] sm:$0xff]  ;;  %v2417_v10 = vld [vmem:[%s4295_s3 + $0x2b8] sm:$0xff] }
  0x2f   : > { %831 = vmatprep.subr.mxu1 %v2381_v14  ;;  %v2868_v14 = vpack.c.bf16 %v741_v12, %v739_v11  ;;  %v2904_v12 = vpack.c.bf16 %v2417_v10, %v2415_v9  ;;  %v2473_v9 = vld [vmem:[%s4297_s5 + $0x210] sm:$0xff]  ;;  %v2474_v10 = vld [vmem:[%s4297_s5 + $0x218] sm:$0xff] }
  0x32   : > { %832 = vmatpush1.msra.mxu1 %v2380_v17  ;;  %v743_v17 = vld [vmem:[%s4295_s3 + $0xa8] sm:$0xff] }
  0x33   : > { %2853 = vmatprep.subr.bf16.mxu1 %v2852_v18  ;;  %v745_v18 = vld [vmem:[%s4295_s3 + $0xb8] sm:$0xff] }
  0xe8   : > { %v2638_v20 = vpop.f32.mrb[0].mxu1 }
  0xe9   : > { %v485_v21 = vpop.f32.mrb[1].mxu1 }
  0xec   : > { %v2641_v22 = vpop.f32.mrb[2].mxu1 }
  0xed   : > { %v495_v23 = vpop.f32.mrb[3].mxu1 }
  0xee   : > { %v2666_v24 = vpop.f32.mrb[0].mxu0 }
  0xef   : > { %v3135_v26 = vadd.f32 %v2666_v24, %v2638_v20  ;;  %v684_v27 = vpop.f32.mrb[1].mxu0  ;;  %v2870_v20 = vpack.c.bf16 %v740_v16, %v738_v15  ;;  %v747_v24 = vld [vmem:[%s4295_s3 + $0xc8] sm:$0xff] }
  0xf0   : > { %v3136_v28 = vadd.f32 %v684_v27, %v485_v21  ;;  %v2872_v21 = vpack.c.bf16 %v745_v18, %v743_v17  ;;  %v2419_v16 = vld [vmem:[%s4295_s3 + $0x2c8] sm:$0xff]  ;;  %v2418_v17 = vld [vmem:[%s4295_s3 + $0x2c0] sm:$0xff]  ;;  %v1134_v18 = vlaneseq }
  0xf1   : > { %v715_v29 = vadd.f32 %v3135_v26, %v2351_v25 }
  0xf2   : > { %v714_v30 = vadd.f32 %v3136_v28, %v2351_v25  ;;  %v2669_v31 = vpop.f32.mrb[2].mxu0  ;;  %v746_v28 = vld [vmem:[%s4295_s3 + $0xc0] sm:$0xff] }
  0xf3   : > { %v3449_v34 = vmax.f32 %v715_v29, 0.0  ;;  %v3137_v35 = vadd.f32 %v2669_v31, %v2641_v22  ;;  %v694_v36 = vpop.f32.mrb[3].mxu0  ;;  %v742_v22 = vld [vmem:[%s4295_s3 + $0xa0] sm:$0xff]  ;;  %v748_v29 = vld [vmem:[%s4295_s3 + $0xd0] sm:$0xff]  ;;  %v751_v31 = vld [vmem:[%s4295_s3 + $0xe8] sm:$0xff] }
  0xf4   : > { %v3451_v37 = vmax.f32 %v714_v30, 0.0  ;;  %v3138_v38 = vadd.f32 %v694_v36, %v495_v23  ;;  %v744_v23 = vld [vmem:[%s4295_s3 + $0xb0] sm:$0xff]  ;;  %v2878_v30 = vpack.c.bf16 %v748_v29, %v746_v28 }
  0xf5   : > { %v788_v41 = vrot.slane %v3449_v34, 1  ;;  %v1021_v42 = vrot.slane %v3449_v34, 2  ;;  %v717_v43 = vadd.f32 %v3137_v35, %v2351_v25  ;;  %v2874_v26 = vpack.c.bf16 %v744_v23, %v742_v22  ;;  %v2390_v35 = vld [vmem:[%s4295_s3 + $0x1e0] sm:$0xff]  ;;  %v2392_v36 = vld [vmem:[%s4295_s3 + $0x1f0] sm:$0xff] }
  0xf6   : > { %v787_v45 = vrot.slane %v3451_v37, 1  ;;  %v1020_v46 = vrot.slane %v3451_v37, 2  ;;  %v716_v47 = vadd.f32 %v3138_v38, %v2351_v25  ;;  %v749_v25 = vld [vmem:[%s4295_s3 + $0xd8] sm:$0xff]  ;;  %v2395_v38 = vld [vmem:[%s4295_s3 + $0x208] sm:$0xff] }
  0xf7   : > { %v3463_v48 = vmax.f32 %v717_v43, 0.0  ;;  %v2876_v27 = vpack.c.bf16 %v749_v25, %v747_v24  ;;  %v2884_v43 = vpack.c.bf16 %v2397_v39, %v2395_v38 }
  0xf8   : > { %v3471_v52 = vmax.f32 %v716_v47, 0.0  ;;  %v789_v53 = vsel %vm402_vm1, %v787_v45, %v788_v41  ;;  %v3481_v56 = vsel %vm602_vm2, %v1020_v46, %v1021_v42  ;;  %v2396_v45 = vld [vmem:[%s4295_s3 + $0x210] sm:$0xff]  ;;  %v2399_v46 = vld [vmem:[%s4295_s3 + $0x228] sm:$0xff]  ;;  %v2401_v47 = vld [vmem:[%s4295_s3 + $0x238] sm:$0xff] }
  0xf9   : > { %v792_v57 = vrot.slane %v3463_v48, 1  ;;  %v1025_v58 = vrot.slane %v3463_v48, 2  ;;  %2382 = vmatmul.mubr.msk.f32.vlgmr.msra.gmra.mrb[4].mxu1 %vm794_vm3, %v789_v53  ;;  %v2888_v50 = vpack.c.bf16 %v2401_v47, %v2399_v46  ;;  %v2400_v53 = vld [vmem:[%s4295_s3 + $0x230] sm:$0xff] }
  0xfa   : > { %v790_v59 = vrot.slane %v3471_v52, 1  ;;  %v1023_v60 = vrot.slane %v3471_v52, 2  ;;  %2855 = vmatpush1.bf16.msra.mxu1 %v2854_v44  ;;  %873 = vmatprep.mubr.f32.mxu1 %v3209_v19  ;;  %v2394_v44 = vld [vmem:[%s4295_s3 + $0x200] sm:$0xff]  ;;  %v2890_v55 = vpack.c.bf16 %v2400_v53, %v2398_v51  ;;  %v2461_v53 = vld [vmem:[%s4297_s5 + $0x1b0] sm:$0xff] }
  0xfb   : > { %2857 = vmatprep.subr.bf16.mxu1 %v2856_v49  ;;  %v2886_v49 = vpack.c.bf16 %v2396_v45, %v2394_v44 }
  0xfc   : > { %v791_v1 = vsel %vm402_vm1, %v788_v41, %v790_v59  ;;  %v793_v2 = vsel %vm402_vm1, %v790_v59, %v792_v57  ;;  %v3504_v5 = vsel %vm602_vm2, %v1021_v42, %v1023_v60  ;;  %v3509_v6 = vsel %vm602_vm2, %v1023_v60, %v1025_v58  ;;  %v2402_v59 = vld [vmem:[%s4295_s3 + $0x240] sm:$0xff]  ;;  %v2404_v60 = vld [vmem:[%s4295_s3 + $0x250] sm:$0xff] }
  0xfd   : > { %2383 = vmatmul.mubr.msk.f32.gmra.mrb[6].mxu1 %vm794_vm3, %v791_v1  ;;  %v2880_v41 = vpack.c.bf16 %v2393_v33, %v2391_v32  ;;  %v2882_v42 = vpack.c.bf16 %v2392_v36, %v2390_v35  ;;  %v2408_v1 = vld [vmem:[%s4295_s3 + $0x270] sm:$0xff] }
  0xfe   : > { %2859 = vmatpush1.bf16.msra.mxu1 %v2858_v61  ;;  %879 = vmatprep.mubr.f32.mxu1 %v3209_v19  ;;  %v2407_v61 = vld [vmem:[%s4295_s3 + $0x268] sm:$0xff]  ;;  %v2898_v3 = vpack.c.bf16 %v2408_v1, %v2406_v0 }
  0xff   : > { %2861 = vmatprep.subr.bf16.mxu1 %v2860_v62  ;;  %v2894_v62 = vpack.c.bf16 %v2404_v60, %v2402_v59  ;;  %v2464_v59 = vld [vmem:[%s4297_s5 + $0x1c8] sm:$0xff] }
 0x100   : > { %v2468_v0 = vld [vmem:[%s4297_s5 + $0x1e8] sm:$0xff] }
 0x101   : > { %2384 = vmatmul.mubr.msk.f32.gmra.mrb[8].mxu1 %vm794_vm3, %v793_v2  ;;  %v2411_v2 = vld [vmem:[%s4295_s3 + $0x288] sm:$0xff] }
 0x102   : > { %2863 = vmatpush1.bf16.msra.mxu1 %v2862_v7  ;;  %885 = vmatprep.mubr.f32.mxu1 %v3209_v19  ;;  %v2410_v7 = vld [vmem:[%s4295_s3 + $0x280] sm:$0xff] }
 0x103   : > { %2865 = vmatprep.subr.bf16.mxu1 %v2864_v8  ;;  %v2412_v8 = vld [vmem:[%s4295_s3 + $0x290] sm:$0xff] }
 0x104   : > { %v2902_v11 = vpack.c.bf16 %v2412_v8, %v2410_v7  ;;  %v2472_v7 = vld [vmem:[%s4297_s5 + $0x208] sm:$0xff] }
 0x105   : > { %2385 = vmatmul.mubr.msk.f32.gmra.mrb[10].mxu1 %vm794_vm3, %v792_v57 }
 0x106   : > { %2867 = vmatpush1.bf16.msra.mxu1 %v2866_v13  ;;  %964 = vmatprep.mubr.f32.mxu1 %v3209_v19  ;;  %v2414_v13 = vld [vmem:[%s4295_s3 + $0x2a0] sm:$0xff] }
 0x107   : > { %2869 = vmatprep.subr.bf16.mxu1 %v2868_v14  ;;  %v2416_v14 = vld [vmem:[%s4295_s3 + $0x2b0] sm:$0xff] }
 0x108   : > { %v2906_v15 = vpack.c.bf16 %v2416_v14, %v2414_v13  ;;  %v2476_v13 = vld [vmem:[%s4297_s5 + $0x228] sm:$0xff] }
 0x10a   : > { %2871 = vmatpush1.bf16.msra.mxu1 %v2870_v20  ;;  %v3680_v20 = vshrl.u32 %v1134_v18, 7 }
 0x10b   : > { %2873 = vmatprep.subr.bf16.mxu1 %v2872_v21 }
 0x10c   : > { %v1140_v21 = vsub.s32 1, %v3680_v20 }
 0x10e   : > { %2875 = vmatpush1.bf16.msra.mxu1 %v2874_v26 }
 0x10f   : > { %2877 = vmatprep.subr.bf16.mxu1 %v2876_v27 }
 0x112   : > { %2879 = vmatpush1.bf16.msra.mxu1 %v2878_v30 }
 0x113   : > { %928 = vmatprep.subr.mxu1 %v751_v31 }
 0x116   : > { %929 = vmatpush1.msra.mxu1 %v750_v40 }
 0x117   : > { %2386 = vmatmul.mubr.msk.f32.vlgmr.msra.gmra.mrb[4].mxu1 %vm794_vm3, %v3451_v37  ;;  %2881 = vmatprep.subr.bf16.mxu1 %v2880_v41  ;;  %v2405_v37 = vld [vmem:[%s4295_s3 + $0x258] sm:$0xff] }
 0x118   : > { %2883 = vmatpush1.bf16.msra.mxu1 %v2882_v42  ;;  %970 = vmatprep.mubr.f32.mxu1 %v3209_v19  ;;  %v2892_v57 = vpack.c.bf16 %v2405_v37, %v2403_v54  ;;  %v3211_v54 = vmov 0.0|0.0   ;;  %v2462_v37 = vld [vmem:[%s4297_s5 + $0x1b8] sm:$0xff] }
 0x119   : > { %2885 = vmatprep.subr.bf16.mxu1 %v2884_v43 }
 0x11b   : > { %2387 = vmatmul.mubr.msk.f32.gmra.mrb[6].mxu1 %vm794_vm3, %v3449_v34  ;;  %v2409_v34 = vld [vmem:[%s4295_s3 + $0x278] sm:$0xff] }
 0x11c   : > { %2887 = vmatpush1.bf16.msra.mxu1 %v2886_v49  ;;  %976 = vmatprep.mubr.f32.mxu1 %v3209_v19  ;;  %v2896_v63 = vpack.c.bf16 %v2409_v34, %v2407_v61  ;;  %v2465_v61 = vld [vmem:[%s4297_s5 + $0x1d0] sm:$0xff]  ;;  %v2466_v34 = vld [vmem:[%s4297_s5 + $0x1d8] sm:$0xff] }
 0x11d   : > { %2889 = vmatprep.subr.bf16.mxu1 %v2888_v50 }
 0x11f   : > { %2388 = vmatmul.mubr.msk.f32.gmra.mrb[8].mxu1 %vm794_vm3, %v3471_v52  ;;  %v2413_v52 = vld [vmem:[%s4295_s3 + $0x298] sm:$0xff] }
 0x120   : > { %2891 = vmatpush1.bf16.msra.mxu1 %v2890_v55  ;;  %982 = vmatprep.mubr.f32.mxu1 %v3209_v19  ;;  %v2900_v4 = vpack.c.bf16 %v2413_v52, %v2411_v2  ;;  %v2997_v55 = vpack.c.bf16 %v2462_v37, %v2461_v53  ;;  %v2469_v2 = vld [vmem:[%s4297_s5 + $0x1f0] sm:$0xff]  ;;  %v2470_v52 = vld [vmem:[%s4297_s5 + $0x1f8] sm:$0xff] }
 0x121   : > { %2893 = vmatprep.subr.bf16.mxu1 %v2892_v57  ;;  %v2463_v57 = vld [vmem:[%s4297_s5 + $0x1c0] sm:$0xff] }
 0x122   : > { %v3000_v60 = vpack.c.bf16 %v2464_v59, %v2463_v57 }
 0x123   : > { %2389 = vmatmul.mubr.msk.f32.gmra.mrb[10].mxu1 %vm794_vm3, %v3463_v48 }
 0x124   : > { %2895 = vmatpush1.bf16.msra.mxu1 %v2894_v62  ;;  %1099 = vmatprep.mubr.f32.mxu1 %v3209_v19  ;;  %v3003_v62 = vpack.c.bf16 %v2466_v34, %v2465_v61 }
 0x125   : > { %2897 = vmatprep.subr.bf16.mxu1 %v2896_v63  ;;  %v2467_v63 = vld [vmem:[%s4297_s5 + $0x1e0] sm:$0xff] }
 0x126   : > { %v3006_v1 = vpack.c.bf16 %v2468_v0, %v2467_v63 }
 0x128   : > { %2899 = vmatpush1.bf16.msra.mxu1 %v2898_v3  ;;  %v3009_v3 = vpack.c.bf16 %v2470_v52, %v2469_v2 }
 0x129   : > { %2901 = vmatprep.subr.bf16.mxu1 %v2900_v4  ;;  %v2471_v4 = vld [vmem:[%s4297_s5 + $0x200] sm:$0xff] }
 0x12a   : > { %v3012_v8 = vpack.c.bf16 %v2472_v7, %v2471_v4  ;;  %v1246_v7 = vand.u32 127, %v1134_v18 }
 0x12c   : > { %2903 = vmatpush1.bf16.msra.mxu1 %v2902_v11  ;;  %v3015_v11 = vpack.c.bf16 %v2474_v10, %v2473_v9 }
 0x12d   : > { %2905 = vmatprep.subr.bf16.mxu1 %v2904_v12  ;;  %v2475_v12 = vld [vmem:[%s4297_s5 + $0x220] sm:$0xff] }
 0x12e   : > { %v3018_v14 = vpack.c.bf16 %v2476_v13, %v2475_v12 }
 0x130   : > { %2907 = vmatpush1.bf16.msra.mxu1 %v2906_v15  ;;  %v2477_v15 = vld [vmem:[%s4297_s5 + $0x230] sm:$0xff] }
 0x131   : > { %1063 = vmatprep.subr.mxu1 %v2419_v16  ;;  %v2478_v16 = vld [vmem:[%s4297_s5 + $0x238] sm:$0xff] }
 0x134   : > { %1064 = vmatpush1.msra.mxu1 %v2418_v17  ;;  %v3021_v17 = vpack.c.bf16 %v2478_v16, %v2477_v15  ;;  %v2431_v16 = vld [vmem:[%s4297_s5 + $0xe0] sm:$0xff] }
 0x135   : > { %2420 = vmatmul.mubr.msk.f32.vlgmr.msra.gmra.mrb[4].mxu1 %vm794_vm3, %v3481_v56  ;;  %v1136_v56 = vsub.s32 0, %v3680_v20  ;;  %2996 = vmatprep.subr.bf16.mxu1 %v3211_v54 }
 0x136   : > { %1105 = vmatprep.mubr.f32.mxu1 %v3209_v19  ;;  %2998 = vmatpush1.bf16.msra.mxu1 %v2997_v55 }
 0x137   : > { %2999 = vmatprep.subr.bf16.mxu1 %v3211_v54 }
 0x139   : > { %2421 = vmatmul.mubr.msk.f32.gmra.mrb[6].mxu1 %vm794_vm3, %v3504_v5  ;;  %v1132_v5 = vld [vmem:[%s4296_s4] sm:$0x3] }
 0x13a   : > { %1111 = vmatprep.mubr.f32.mxu1 %v3209_v19  ;;  %v1137_v22 = vrot.slane %v1132_v5, %v1136_v56  ;;  %3001 = vmatpush1.bf16.msra.mxu1 %v3000_v60  ;;  %v2479_v56 = vld [vmem:[%s4297_s5 + $0x240] sm:$0xff] }
 0x13b   : > { %3002 = vmatprep.subr.bf16.mxu1 %v3211_v54 }
 0x13d   : > { %2422 = vmatmul.mubr.msk.f32.gmra.mrb[8].mxu1 %vm794_vm3, %v3509_v6  ;;  %v1141_v6 = vrot.slane %v1132_v5, %v1140_v21  ;;  %v2480_v5 = vld [vmem:[%s4297_s5 + $0x248] sm:$0xff] }
 0x13e   : > { %1117 = vmatprep.mubr.f32.mxu1 %v3209_v19  ;;  %3004 = vmatpush1.bf16.msra.mxu1 %v3003_v62  ;;  %v3024_v21 = vpack.c.bf16 %v2480_v5, %v2479_v56 }
 0x13f   : > { %3005 = vmatprep.subr.bf16.mxu1 %v3211_v54 }
 0x141   : > { %2423 = vmatmul.mubr.msk.f32.gmra.mrb[10].mxu1 %vm794_vm3, %v1025_v58 }
 0x142   : > { %3007 = vmatpush1.bf16.msra.mxu1 %v3006_v1 }
 0x143   : > { %3008 = vmatprep.subr.bf16.mxu1 %v3211_v54 }
 0x146   : > { %3010 = vmatpush1.bf16.msra.mxu1 %v3009_v3 }
 0x147   : > { %3011 = vmatprep.subr.bf16.mxu1 %v3211_v54 }
 0x14a   : > { %3013 = vmatpush1.bf16.msra.mxu1 %v3012_v8 }
 0x14b   : > { %3014 = vmatprep.subr.bf16.mxu1 %v3211_v54 }
 0x14e   : > { %3016 = vmatpush1.bf16.msra.mxu1 %v3015_v11 }
 0x14f   : > { %3017 = vmatprep.subr.bf16.mxu1 %v3211_v54 }
 0x152   : > { %3019 = vmatpush1.bf16.msra.mxu1 %v3018_v14 }
 0x153   : > { %3020 = vmatprep.subr.bf16.mxu1 %v3211_v54 }
 0x156   : > { %3022 = vmatpush1.bf16.msra.mxu1 %v3021_v17 }
 0x157   : > { %3023 = vmatprep.subr.bf16.mxu1 %v3211_v54 }
 0x15a   : > { %3025 = vmatpush1.bf16.msra.mxu1 %v3024_v21  ;;  %v2432_v21 = vld [vmem:[%s4297_s5 + $0xe8] sm:$0xff] }
 0x15b   : > { %3026 = vmatprep.subr.bf16.mxu1 %v3211_v54 }
 0x208   : > { %v1101_v23 = vpop.f32.mrb[4].mxu1 }
 0x209   : > { %v3687_v24 = vadd.f32 %v1137_v22, %v1101_v23  ;;  %v1103_v48 = vpop.f32.mrb[5].mxu1 }
 0x20a   : > { %v3689_v25 = vadd.f32 %v1141_v6, %v1103_v48 }
 0x20b   : > { %v1152_v58 = vmax.f32 %v3687_v24, 0.0 }
 0x20c   : > { %v1153_v26 = vmax.f32 %v3689_v25, 0.0  ;;  %v1107_v27 = vpop.f32.mrb[6].mxu1 }
 0x20d   : > { %v3693_v28 = vadd.f32 %v1137_v22, %v1107_v27  ;;  %v1109_v29 = vpop.f32.mrb[7].mxu1 }
 0x20e   : > { %v3695_v30 = vadd.f32 %v1141_v6, %v1109_v29  ;;  %v3176_v31 = vpack.i.bf16 %v1153_v26, %v1152_v58 }
 0x20f   : > { %v1154_v32 = vmax.f32 %v3693_v28, 0.0 }
 0x210   : > { %v1155_v33 = vmax.f32 %v3695_v30, 0.0  ;;  %3177 = vrot.lane.b32.xlu0 %v3176_v31, %s3210_s27  ;;  %v1113_v35 = vpop.f32.mrb[8].mxu1 }
 0x211   : > { %v3704_v36 = vadd.f32 %v1137_v22, %v1113_v35  ;;  %v1115_v38 = vpop.f32.mrb[9].mxu1 }
 0x212   : > { %v3181_v39 = vpack.i.bf16 %v1155_v33, %v1154_v32  ;;  %v3710_v40 = vadd.f32 %v1141_v6, %v1115_v38 }
 0x213   : > { %v1156_v41 = vmax.f32 %v3704_v36, 0.0 }
 0x214   : > { %v1157_v42 = vmax.f32 %v3710_v40, 0.0  ;;  %3182 = vrot.lane.b32.xlu0 %v3181_v39, %s3210_s27  ;;  %v1119_v43 = vpop.f32.mrb[10].mxu1 }
 0x215   : > { %v3715_v44 = vadd.f32 %v1137_v22, %v1119_v43  ;;  %v1121_v45 = vpop.f32.mrb[11].mxu1  ;;  %v2481_v22 = vld [vmem:[%s4297_s5 + $0x250] sm:$0xff] }
 0x216   : > { %v3717_v46 = vadd.f32 %v1141_v6, %v1121_v45  ;;  %v3186_v47 = vpack.i.bf16 %v1157_v42, %v1156_v41  ;;  %v2482_v6 = vld [vmem:[%s4297_s5 + $0x258] sm:$0xff] }
 0x217   : > { %v1158_v49 = vmax.f32 %v3715_v44, 0.0  ;;  %v3027_v23 = vpack.c.bf16 %v2482_v6, %v2481_v22  ;;  %v2433_v22 = vld [vmem:[%s4297_s5 + $0xf0] sm:$0xff] }
 0x218   : > { %v1159_v50 = vmax.f32 %v3717_v46, 0.0  ;;  %3187 = vrot.lane.b32.xlu1 %v3186_v47, %s3210_s27  ;;  %v1247_v46 = vmul.u32 2, %v3680_v20 }
 0x219   : > { %3028 = vmatpush1.bf16.msra.mxu1 %v3027_v23  ;;  %v2922_v23 = vpack.c.bf16 %v2433_v22, %v2432_v21 }
 0x21a   : > { %v3191_v51 = vpack.i.bf16 %v1159_v50, %v1158_v49  ;;  %3029 = vmatprep.subr.bf16.mxu1 %v3211_v54  ;;  %vm1249_vm7 = vcmp.eq.s32.totalorder %v1246_v7, %v1247_v46 }
 0x21b   : > { %v3847_v56 = vsel %vm1249_vm7, 1.0, %v3209_v19 }
 0x21c   : > { %3192 = vrot.lane.b32.xlu1 %v3191_v51, %s3210_s27 }
 0x282   : > { %v3178_v48 = vpop.permute.xlu0 %3177 }
 0x283   : > { %v3180_v27 = vunpack.i.h.bf16 %v3178_v48  ;;  %v3179_v29 = vunpack.i.l.bf16 %v3178_v48  ;;  %v2434_v48 = vld [vmem:[%s4297_s5 + $0xf8] sm:$0xff] }
 0x285   : > { %v1184_v35 = vsel %vm794_vm3, %v3179_v29, %v3180_v27  ;;  %v1197_v43 = vmax.f32 %v1153_v26, %v3180_v27  ;;  %v2435_v27 = vld [vmem:[%s4297_s5 + $0x100] sm:$0xff] }
 0x286   : > { %v3183_v31 = vpop.permute.xlu0 %3182  ;;  %v1196_v51 = vmax.f32 %v1152_v58, %v1184_v35  ;;  %v2925_v29 = vpack.c.bf16 %v2435_v27, %v2434_v48  ;;  %v2437_v35 = vld [vmem:[%s4297_s5 + $0x110] sm:$0xff]  ;;  %v1349_v48 = vld [vmem:[%s4297_s5 + $0x18] sm:$0xff] }
 0x287   : > { %v3185_v38 = vunpack.i.h.bf16 %v3183_v31  ;;  %v3184_v39 = vunpack.i.l.bf16 %v3183_v31  ;;  %v1215_v61 = vrot.slane %v1197_v43, 1  ;;  %v2436_v31 = vld [vmem:[%s4297_s5 + $0x108] sm:$0xff] }
 0x288   : > { %v1212_v30 = vrot.slane %v1196_v51, 1 }
 0x289   : > { %v1199_v45 = vmax.f32 %v1155_v33, %v3185_v38  ;;  %v1185_v47 = vsel %vm794_vm3, %v3184_v39, %v3185_v38  ;;  %v2928_v38 = vpack.c.bf16 %v2437_v35, %v2436_v31  ;;  %v2438_v39 = vld [vmem:[%s4297_s5 + $0x118] sm:$0xff]  ;;  %v1351_v31 = vld [vmem:[%s4297_s5 + $0x28] sm:$0xff] }
 0x28a   : > { %v1198_v53 = vmax.f32 %v1154_v32, %v1185_v47  ;;  %v3188_v37 = vpop.permute.xlu1 %3187  ;;  %v2440_v47 = vld [vmem:[%s4297_s5 + $0x128] sm:$0xff] }
 0x28b   : > { %v1216_v55 = vrot.slane %v1199_v45, 1  ;;  %v3190_v57 = vunpack.i.h.bf16 %v3188_v37  ;;  %v3189_v59 = vunpack.i.l.bf16 %v3188_v37  ;;  %v2442_v37 = vld [vmem:[%s4297_s5 + $0x138] sm:$0xff] }
 0x28c   : > { %v1213_v60 = vrot.slane %v1198_v53, 1 }
 0x28d   : > { %v1201_v25 = vmax.f32 %v1157_v42, %v3190_v57  ;;  %v1186_v26 = vsel %vm794_vm3, %v3189_v59, %v3190_v57  ;;  %v1217_v32 = vsel %vm402_vm1, %v1215_v61, %v1216_v55  ;;  %v2444_v59 = vld [vmem:[%s4297_s5 + $0x148] sm:$0xff] }
 0x28e   : > { %v1200_v33 = vmax.f32 %v1156_v41, %v1186_v26  ;;  %v3193_v24 = vpop.permute.xlu1 %3192  ;;  %v1214_v63 = vsel %vm402_vm1, %v1212_v30, %v1213_v60  ;;  %v1235_v41 = vmax.f32 %v1197_v43, %v1217_v32  ;;  %v2439_v43 = vld [vmem:[%s4297_s5 + $0x120] sm:$0xff] }
 0x28f   : > { %v1220_v58 = vrot.slane %v1201_v25, 1  ;;  %v3195_v34 = vunpack.i.h.bf16 %v3193_v24  ;;  %v3194_v28 = vunpack.i.l.bf16 %v3193_v24  ;;  %v1234_v3 = vmax.f32 %v1196_v51, %v1214_v63  ;;  %v2441_v51 = vld [vmem:[%s4297_s5 + $0x130] sm:$0xff]  ;;  %v2447_v26 = vld [vmem:[%s4297_s5 + $0x160] sm:$0xff] }
 0x290   : > { %v1218_v62 = vrot.slane %v1200_v33, 1  ;;  %v2449_v24 = vld [vmem:[%s4297_s5 + $0x170] sm:$0xff] }
 0x291   : > { %v1203_v40 = vmax.f32 %v1159_v50, %v3195_v34  ;;  %v1187_v42 = vsel %vm794_vm3, %v3194_v28, %v3195_v34  ;;  %v1221_v0 = vsel %vm402_vm1, %v1216_v55, %v1220_v58  ;;  %v1244_v50 = vadd.s32 8, %v3680_v20  ;;  %v2430_v20 = vld [vmem:[%s4297_s5 + $0xd8] sm:$0xff]  ;;  %v2443_v55 = vld [vmem:[%s4297_s5 + $0x140] sm:$0xff]  ;;  %v2453_v63 = vld [vmem:[%s4297_s5 + $0x190] sm:$0xff] }
 0x292   : > { %v1202_v36 = vmax.f32 %v1158_v49, %v1187_v42  ;;  %v1237_v1 = vmax.f32 %v1199_v45, %v1221_v0  ;;  %v1219_v2 = vsel %vm402_vm1, %v1213_v60, %v1218_v62  ;;  %v2919_v5 = vpack.c.bf16 %v2431_v16, %v2430_v20  ;;  %v2445_v60 = vld [vmem:[%s4297_s5 + $0x150] sm:$0xff]  ;;  %v2450_v34 = vld [vmem:[%s4297_s5 + $0x178] sm:$0xff]  ;;  %v2451_v28 = vld [vmem:[%s4297_s5 + $0x180] sm:$0xff] }
 0x293   : > { %v1224_v52 = vrot.slane %v1203_v40, 1  ;;  %v1236_v4 = vmax.f32 %v1198_v53, %v1219_v2  ;;  %v1248_v15 = vmul.u32 2, %v1244_v50  ;;  %v2931_v45 = vpack.c.bf16 %v2439_v43, %v2438_v39  ;;  %v2483_v42 = vld [vmem:[%s4297_s5 + $0x260] sm:$0xff]  ;;  %v2484_v0 = vld [vmem:[%s4297_s5 + $0x268] sm:$0xff]  ;;  %v1353_v39 = vld [vmem:[%s4297_s5 + $0x38] sm:$0xff] }
 0x294   : > { %v1222_v8 = vrot.slane %v1202_v36, 1  ;;  %v2908_v9 = vpack.c.bf16 %v1237_v1, %v1235_v41  ;;  %v2934_v53 = vpack.c.bf16 %v2441_v51, %v2440_v47  ;;  %v2937_v57 = vpack.c.bf16 %v2443_v55, %v2442_v37  ;;  %v2454_v41 = vld [vmem:[%s4297_s5 + $0x198] sm:$0xff]  ;;  %v2455_v1 = vld [vmem:[%s4297_s5 + $0x1a0] sm:$0xff]  ;;  %v1355_v47 = vld [vmem:[%s4297_s5 + $0x48] sm:$0xff] }
 0x295   : > { %v1225_v10 = vsel %vm402_vm1, %v1220_v58, %v1224_v52  ;;  %v1241_v11 = vmax.f32 %v1203_v40, %v1224_v52  ;;  %v2910_v44 = vpack.c.bf16 %v1236_v4, %v1234_v3  ;;  %vm1250_vm9 = vcmp.eq.s32.totalorder %v1246_v7, %v1248_v15  ;;  %v2485_v52 = vld [vmem:[%s4297_s5 + $0x270] sm:$0xff]  ;;  %v2486_v3 = vld [vmem:[%s4297_s5 + $0x278] sm:$0xff]  ;;  %v2456_v7 = vld [vmem:[%s4297_s5 + $0x1a8] sm:$0xff] }
 0x296   : > { %v1239_v49 = vmax.f32 %v1201_v25, %v1225_v10  ;;  %v1223_v12 = vsel %vm402_vm1, %v1218_v62, %v1222_v8  ;;  %v1240_v13 = vmax.f32 %v1202_v36, %v1222_v8  ;;  %2909 = vmatprep.subr.bf16.mxu0 %v2908_v9  ;;  %v2425_v6 = vsel %vm1250_vm9, 1.0, %v3209_v19  ;;  %v2446_v25 = vld [vmem:[%s4297_s5 + $0x158] sm:$0xff]  ;;  %v2452_v62 = vld [vmem:[%s4297_s5 + $0x188] sm:$0xff]  ;;  %v2487_v8 = vld [vmem:[%s4297_s5 + $0x280] sm:$0xff] }
 0x297   : > { %v1238_v14 = vmax.f32 %v1200_v33, %v1223_v12  ;;  %2911 = vmatpush1.bf16.msra.mxu0 %v2910_v44  ;;  %v2940_v61 = vpack.c.bf16 %v2445_v60, %v2444_v59  ;;  %v2943_v30 = vpack.c.bf16 %v2447_v26, %v2446_v25  ;;  %v2448_v33 = vld [vmem:[%s4297_s5 + $0x168] sm:$0xff]  ;;  %v2949_v32 = vpack.c.bf16 %v2451_v28, %v2450_v34  ;;  %v1346_v10 = vld [vmem:[%s4297_s5] sm:$0xff]  ;;  %v1357_v37 = vld [vmem:[%s4297_s5 + $0x58] sm:$0xff] }
 0x298   : > { %v2912_v18 = vpack.c.bf16 %v1241_v11, %v1239_v49  ;;  %v2946_v58 = vpack.c.bf16 %v2449_v24, %v2448_v33  ;;  %v2952_v40 = vpack.c.bf16 %v2453_v63, %v2452_v62  ;;  %v3030_v36 = vpack.c.bf16 %v2484_v0, %v2483_v42  ;;  %v1347_v11 = vld [vmem:[%s4297_s5 + $0x8] sm:$0xff]  ;;  %v1361_v25 = vld [vmem:[%s4297_s5 + $0x78] sm:$0xff] }
 0x299   : > { %v2915_v17 = vpack.c.bf16 %v1240_v13, %v1238_v14  ;;  %v2955_v2 = vpack.c.bf16 %v2455_v1, %v2454_v41  ;;  %v3033_v4 = vpack.c.bf16 %v2486_v3, %v2485_v52  ;;  %v1359_v59 = vld [vmem:[%s4297_s5 + $0x68] sm:$0xff]  ;;  %v1365_v34 = vld [vmem:[%s4297_s5 + $0x98] sm:$0xff]  ;;  %v2491_v52 = vld [vmem:[%s4299_s7 + $0x60] sm:$0xff] }
 0x29a   : > { %2914 = vmatprep.subr.msk.bf16.mxu0 %vm2913_vm6, %v2912_v18  ;;  %3031 = vmatpush1.bf16.msra.mxu1 %v3030_v36  ;;  %v1363_v33 = vld [vmem:[%s4297_s5 + $0x88] sm:$0xff]  ;;  %v1369_v42 = vld [vmem:[%s4297_s5 + $0xb8] sm:$0xff]  ;;  %v1370_v36 = vld [vmem:[%s4297_s5 + $0xc0] sm:$0xff] }
 0x29b   : > { %2917 = vmatpush1.bf16.msk.msra.mxu0 %vm2913_vm6, %v2915_v17  ;;  %3032 = vmatprep.subr.bf16.mxu1 %v3211_v54  ;;  %v1367_v62 = vld [vmem:[%s4297_s5 + $0xa8] sm:$0xff] }
 0x29c   : > { %2918 = vmatprep.subr.bf16.mxu0 %v3211_v54  ;;  %v1371_v41 = vld [vmem:[%s4297_s5 + $0xc8] sm:$0xff] }
 0x29d   : > { %v2994_v1 = vpack.c.bf16 %v1371_v41, %v1370_v36  ;;  %v2492_v3 = vld [vmem:[%s4299_s7 + $0x68] sm:$0xff]  ;;  %v1708_v36 = vld [vmem:[%s4299_s7 + $0x40] sm:$0xff] }
 0x29e   : > { %2428 = vmatmul.mubr.msk.f32.vlgmr.msra.gmra.mrb[4].mxu0 %vm1255_vm8, %v3847_v56  ;;  %3034 = vmatpush1.bf16.msra.mxu1 %v3033_v4  ;;  %v2493_v4 = vld [vmem:[%s4299_s7 + $0x70] sm:$0xff]  ;;  %v1709_v41 = vld [vmem:[%s4299_s7 + $0x48] sm:$0xff] }
 0x29f   : > { %1339 = vmatprep.mubr.f32.mxu0 %v3209_v19  ;;  %2920 = vmatpush1.bf16.msra.mxu0 %v2919_v5  ;;  %v2958_v5 = vpack.c.bf16 %v1347_v11, %v1346_v10  ;;  %v2497_v11 = vld [vmem:[%s4299_s7 + $0x90] sm:$0xff] }
 0x2a0   : > { %2921 = vmatprep.subr.bf16.mxu0 %v3211_v54  ;;  %1664 = vmatprep.subr.mxu1 %v3209_v19 }
 0x2a2   : > { %2429 = vmatmul.mubr.msk.f32.gmra.mrb[6].mxu0 %vm1255_vm8, %v2425_v6  ;;  %1665 = vmatpush1.msra.mxu1 %v2487_v8  ;;  %v2494_v8 = vld [vmem:[%s4299_s7 + $0x78] sm:$0xff] }
 0x2a3   : > { %2923 = vmatpush1.bf16.msra.mxu0 %v2922_v23  ;;  %3107 = vmatprep.subr.bf16.mxu1 %v3211_v54  ;;  %v1348_v23 = vld [vmem:[%s4297_s5 + $0x10] sm:$0xff] }
 0x2a4   : > { %2924 = vmatprep.subr.bf16.mxu0 %v3211_v54  ;;  %v2961_v27 = vpack.c.bf16 %v1349_v48, %v1348_v23 }
 0x2a7   : > { %2926 = vmatpush1.bf16.msra.mxu0 %v2925_v29  ;;  %v1350_v29 = vld [vmem:[%s4297_s5 + $0x20] sm:$0xff] }
 0x2a8   : > { %2927 = vmatprep.subr.bf16.mxu0 %v3211_v54  ;;  %v2964_v35 = vpack.c.bf16 %v1351_v31, %v1350_v29 }
 0x2ab   : > { %2929 = vmatpush1.bf16.msra.mxu0 %v2928_v38  ;;  %v1352_v38 = vld [vmem:[%s4297_s5 + $0x30] sm:$0xff] }
 0x2ac   : > { %2930 = vmatprep.subr.bf16.mxu0 %v3211_v54  ;;  %v2967_v43 = vpack.c.bf16 %v1353_v39, %v1352_v38 }
 0x2af   : > { %2932 = vmatpush1.bf16.msra.mxu0 %v2931_v45  ;;  %v1354_v45 = vld [vmem:[%s4297_s5 + $0x40] sm:$0xff] }
 0x2b0   : > { %2933 = vmatprep.subr.bf16.mxu0 %v3211_v54  ;;  %v2970_v51 = vpack.c.bf16 %v1355_v47, %v1354_v45 }
 0x2b3   : > { %2935 = vmatpush1.bf16.msra.mxu0 %v2934_v53  ;;  %v1356_v53 = vld [vmem:[%s4297_s5 + $0x50] sm:$0xff] }
 0x2b4   : > { %2936 = vmatprep.subr.bf16.mxu0 %v3211_v54  ;;  %v2973_v55 = vpack.c.bf16 %v1357_v37, %v1356_v53 }
 0x2b7   : > { %2938 = vmatpush1.bf16.msra.mxu0 %v2937_v57  ;;  %v1358_v57 = vld [vmem:[%s4297_s5 + $0x60] sm:$0xff] }
 0x2b8   : > { %2939 = vmatprep.subr.bf16.mxu0 %v3211_v54  ;;  %v2976_v60 = vpack.c.bf16 %v1359_v59, %v1358_v57 }
 0x2bb   : > { %2941 = vmatpush1.bf16.msra.mxu0 %v2940_v61  ;;  %v1360_v61 = vld [vmem:[%s4297_s5 + $0x70] sm:$0xff] }
 0x2bc   : > { %2942 = vmatprep.subr.bf16.mxu0 %v3211_v54  ;;  %v2979_v26 = vpack.c.bf16 %v1361_v25, %v1360_v61  ;;  %v1702_v61 = vld [vmem:[%s4299_s7 + $0x10] sm:$0xff]  ;;  %v1703_v25 = vld [vmem:[%s4299_s7 + $0x18] sm:$0xff] }
 0x2bf   : > { %2944 = vmatpush1.bf16.msra.mxu0 %v2943_v30  ;;  %v1362_v30 = vld [vmem:[%s4297_s5 + $0x80] sm:$0xff] }
 0x2c0   : > { %2945 = vmatprep.subr.bf16.mxu0 %v3211_v54  ;;  %v2982_v24 = vpack.c.bf16 %v1363_v33, %v1362_v30 }
 0x2c3   : > { %2947 = vmatpush1.bf16.msra.mxu0 %v2946_v58  ;;  %v1364_v58 = vld [vmem:[%s4297_s5 + $0x90] sm:$0xff] }
 0x2c4   : > { %2948 = vmatprep.subr.bf16.mxu0 %v3211_v54  ;;  %v2985_v28 = vpack.c.bf16 %v1365_v34, %v1364_v58  ;;  %v3063_v34 = vpack.c.bf16 %v1703_v25, %v1702_v61  ;;  %v2526_v61 = vld [vmem:[%s4301_s9 + $0x58] sm:$0xff]  ;;  %v2527_v25 = vld [vmem:[%s4301_s9 + $0x60] sm:$0xff] }
 0x2c7   : > { %2950 = vmatpush1.bf16.msra.mxu0 %v2949_v32  ;;  %v1366_v32 = vld [vmem:[%s4297_s5 + $0xa0] sm:$0xff] }
 0x2c8   : > { %2951 = vmatprep.subr.bf16.mxu0 %v3211_v54  ;;  %v2988_v63 = vpack.c.bf16 %v1367_v62, %v1366_v32  ;;  %v1704_v32 = vld [vmem:[%s4299_s7 + $0x20] sm:$0xff]  ;;  %v1705_v62 = vld [vmem:[%s4299_s7 + $0x28] sm:$0xff] }
 0x2cb   : > { %2953 = vmatpush1.bf16.msra.mxu0 %v2952_v40  ;;  %v1368_v40 = vld [vmem:[%s4297_s5 + $0xb0] sm:$0xff] }
 0x2cc   : > { %2954 = vmatprep.subr.bf16.mxu0 %v3211_v54  ;;  %v2991_v0 = vpack.c.bf16 %v1369_v42, %v1368_v40  ;;  %v1706_v40 = vld [vmem:[%s4299_s7 + $0x30] sm:$0xff]  ;;  %v1707_v42 = vld [vmem:[%s4299_s7 + $0x38] sm:$0xff] }
 0x2cf   : > { %2956 = vmatpush1.bf16.msra.mxu0 %v2955_v2  ;;  %v1372_v2 = vld [vmem:[%s4297_s5 + $0xd0] sm:$0xff] }
 0x2d0   : > { %1470 = vmatprep.subr.mxu0 %v3209_v19 }
 0x2d3   : > { %1471 = vmatpush1.msra.mxu0 %v2456_v7  ;;  %v3035_v7 = vpack.c.bf16 %v2492_v3, %v2491_v52  ;;  %v1711_v52 = vld [vmem:[%s4299_s7 + $0x58] sm:$0xff] }
 0x2d4   : > { %2957 = vmatprep.subr.bf16.mxu0 %v3211_v54 }
 0x371   : > { %v3960_v9 = vpop.f32.mrb[4].mxu0 }
 0x372   : > { %v1337_v46 = vpop.f32.mrb[5].mxu0  ;;  %v1405_v44 = vrot.slane %v3960_v9, 1  ;;  %v1600_v49 = vrot.slane %v3960_v9, 2 }
 0x373   : > { %v1408_v18 = vrot.slane %v1337_v46, 1  ;;  %v1603_v15 = vrot.slane %v1337_v46, 2 }
 0x375   : > { %v3962_v50 = vpop.f32.mrb[6].mxu0 }
 0x376   : > { %v1406_v12 = vrot.slane %v3962_v50, 1  ;;  %v1601_v13 = vrot.slane %v3962_v50, 2  ;;  %v3974_v14 = vpop.f32.mrb[7].mxu0 }
 0x377   : > { %v1409_v20 = vrot.slane %v3974_v14, 1  ;;  %v1604_v16 = vrot.slane %v3974_v14, 2 }
 0x378   : > { %v1407_v17 = vsel %vm402_vm1, %v1405_v44, %v1406_v12  ;;  %v1602_v21 = vsel %vm602_vm2, %v1600_v49, %v1601_v13  ;;  %v2498_v44 = vld [vmem:[%s4299_s7 + $0x98] sm:$0xff] }
 0x379   : > { %v1410_v22 = vsel %vm402_vm1, %v1408_v18, %v1409_v20  ;;  %v1605_v6 = vsel %vm602_vm2, %v1603_v15, %v1604_v16  ;;  %v3047_v49 = vpack.c.bf16 %v2498_v44, %v2497_v11  ;;  %v2501_v18 = vld [vmem:[%s4299_s7 + $0xb0] sm:$0xff]  ;;  %v2502_v15 = vld [vmem:[%s4299_s7 + $0xb8] sm:$0xff]  ;;  %v2512_v11 = vld [vmem:[%s4299_s7 + $0xe8] sm:$0xff] }
 0x37a   : > { %2457 = vmatprep.mubr.msk.f32.mxu0 %vm1413_vm10, %v1410_v22  ;;  %2488 = vmatprep.mubr.msk.f32.mxu1 %vm1413_vm10, %v1605_v6 }
 0x37b   : > { %1483 = vmatmul.mubr.f32.vlgmr.msra.gmra.mrb[8].mxu0 %v1407_v17  ;;  %1677 = vmatmul.mubr.f32.vlgmr.msra.gmra.mrb[12].mxu1 %v1602_v21  ;;  %v1701_v17 = vld [vmem:[%s4299_s7 + $0x8] sm:$0xff] }
 0x37c   : > { %2959 = vmatpush1.bf16.msra.mxu0 %v2958_v5  ;;  %2458 = vmatprep.mubr.msk.f32.mxu0 %vm1413_vm10, %v1409_v20  ;;  %v3055_v20 = vpack.c.bf16 %v2502_v15, %v2501_v18  ;;  %v2516_v18 = vld [vmem:[%s4299_s7 + $0x108] sm:$0xff] }
 0x37d   : > { %2489 = vmatprep.mubr.msk.f32.mxu1 %vm1413_vm10, %v1604_v16  ;;  %2960 = vmatprep.subr.bf16.mxu0 %v3211_v54  ;;  %v1700_v16 = vld [vmem:[%s4299_s7] sm:$0xff] }
 0x37e   : > { %v3059_v5 = vpack.c.bf16 %v1701_v17, %v1700_v16  ;;  %v2518_v16 = vld [vmem:[%s4299_s7 + $0x118] sm:$0xff] }
 0x37f   : > { %1488 = vmatmul.mubr.f32.gmra.mrb[10].mxu0 %v1406_v12  ;;  %1682 = vmatmul.mubr.f32.gmra.mrb[14].mxu1 %v1601_v13  ;;  %v2499_v12 = vld [vmem:[%s4299_s7 + $0xa0] sm:$0xff]  ;;  %v2500_v13 = vld [vmem:[%s4299_s7 + $0xa8] sm:$0xff] }
 0x380   : > { %2962 = vmatpush1.bf16.msra.mxu0 %v2961_v27  ;;  %2459 = vmatprep.mubr.msk.f32.mxu0 %vm1413_vm10, %v1337_v46  ;;  %v2495_v46 = vld [vmem:[%s4299_s7 + $0x80] sm:$0xff] }
 0x381   : > { %2963 = vmatprep.subr.bf16.mxu0 %v3211_v54  ;;  %2755 = vmatprep.mubr.msk.f32.mxu1 %vm3213_vm12, %v3209_v19 }
 0x384   : > { %2965 = vmatpush1.bf16.msra.mxu0 %v2964_v35 }
 0x385   : > { %2966 = vmatprep.subr.bf16.mxu0 %v3211_v54 }
 0x388   : > { %2968 = vmatpush1.bf16.msra.mxu0 %v2967_v43  ;;  %v2490_v43 = vld [vmem:[%s4298_s6] ss:$0 sm:$0xff] }
 0x389   : > { %2969 = vmatprep.subr.bf16.mxu0 %v3211_v54 }
 0x38c   : > { %2971 = vmatpush1.bf16.msra.mxu0 %v2970_v51 }
 0x38d   : > { %2972 = vmatprep.subr.bf16.mxu0 %v3211_v54 }
 0x390   : > { %2974 = vmatpush1.bf16.msra.mxu0 %v2973_v55 }
 0x391   : > { %2975 = vmatprep.subr.bf16.mxu0 %v3211_v54 }
 0x394   : > { %2977 = vmatpush1.bf16.msra.mxu0 %v2976_v60 }
 0x395   : > { %2978 = vmatprep.subr.bf16.mxu0 %v3211_v54 }
 0x398   : > { %2980 = vmatpush1.bf16.msra.mxu0 %v2979_v26 }
 0x399   : > { %2981 = vmatprep.subr.bf16.mxu0 %v3211_v54 }
 0x39c   : > { %2983 = vmatpush1.bf16.msra.mxu0 %v2982_v24 }
 0x39d   : > { %2984 = vmatprep.subr.bf16.mxu0 %v3211_v54 }
 0x3a0   : > { %2986 = vmatpush1.bf16.msra.mxu0 %v2985_v28 }
 0x3a1   : > { %2987 = vmatprep.subr.bf16.mxu0 %v3211_v54 }
 0x3a4   : > { %2989 = vmatpush1.bf16.msra.mxu0 %v2988_v63  ;;  %v3067_v63 = vpack.c.bf16 %v1705_v62, %v1704_v32  ;;  %v2093_v32 = vld [vmem:[%s4301_s9] sm:$0xff]  ;;  %v2094_v62 = vld [vmem:[%s4301_s9 + $0x8] sm:$0xff] }
 0x3a5   : > { %2990 = vmatprep.subr.bf16.mxu0 %v3211_v54 }
 0x3a8   : > { %2992 = vmatpush1.bf16.msra.mxu0 %v2991_v0  ;;  %v3071_v0 = vpack.c.bf16 %v1707_v42, %v1706_v40  ;;  %v3124_v40 = vpack.c.bf16 %v2094_v62, %v2093_v32 }
 0x3a9   : > { %2993 = vmatprep.subr.bf16.mxu0 %v3211_v54 }
 0x3ac   : > { %2995 = vmatpush1.bf16.msra.mxu0 %v2994_v1  ;;  %v3075_v1 = vpack.c.bf16 %v1709_v41, %v1708_v36  ;;  %v2095_v36 = vld [vmem:[%s4301_s9 + $0x10] sm:$0xff]  ;;  %v2096_v41 = vld [vmem:[%s4301_s9 + $0x18] sm:$0xff] }
 0x3ad   : > { %1549 = vmatprep.subr.mxu0 %v3209_v19 }
 0x3b0   : > { %1550 = vmatpush1.msra.mxu0 %v1372_v2  ;;  %v1710_v2 = vld [vmem:[%s4299_s7 + $0x50] sm:$0xff] }
 0x3b1   : > { %1562 = vmatmul.mubr.f32.vlgmr.msra.gmra.mrb[12].mxu0 %v3960_v9  ;;  %v3039_v9 = vpack.c.bf16 %v2494_v8, %v2493_v4  ;;  %3036 = vmatprep.subr.bf16.mxu0 %v3035_v7  ;;  %v3079_v3 = vpack.c.bf16 %v1711_v52, %v1710_v2  ;;  %v2507_v4 = vld [vmem:[%s4299_s7 + $0xc0] sm:$0xff]  ;;  %v2098_v52 = vld [vmem:[%s4301_s9 + $0x28] sm:$0xff] }
 0x3b2   : > { %2460 = vmatprep.mubr.msk.f32.mxu0 %vm1413_vm10, %v3974_v14  ;;  %3038 = vmatpush3.bf16.msra.mxu0 %v3035_v7  ;;  %v3051_v14 = vpack.c.bf16 %v2500_v13, %v2499_v12  ;;  %v2508_v7 = vld [vmem:[%s4299_s7 + $0xc8] sm:$0xff]  ;;  %v2514_v12 = vld [vmem:[%s4299_s7 + $0xf8] sm:$0xff]  ;;  %v2097_v2 = vld [vmem:[%s4301_s9 + $0x20] sm:$0xff] }
 0x3b3   : > { %3040 = vmatprep.subr.bf16.mxu0 %v3039_v9  ;;  %v3083_v8 = vpack.c.bf16 %v2508_v7, %v2507_v4  ;;  %v2099_v4 = vld [vmem:[%s4301_s9 + $0x30] sm:$0xff]  ;;  %v2100_v7 = vld [vmem:[%s4301_s9 + $0x38] sm:$0xff] }
 0x3b5   : > { %1567 = vmatmul.mubr.f32.gmra.mrb[14].mxu0 %v3962_v50  ;;  %v2496_v50 = vld [vmem:[%s4299_s7 + $0x88] sm:$0xff] }
 0x3b6   : > { %3042 = vmatpush3.bf16.msra.mxu0 %v3039_v9  ;;  %v3043_v10 = vpack.c.bf16 %v2496_v50, %v2495_v46  ;;  %v2509_v9 = vld [vmem:[%s4299_s7 + $0xd0] sm:$0xff]  ;;  %v2510_v46 = vld [vmem:[%s4299_s7 + $0xd8] sm:$0xff] }
 0x3b7   : > { %v3087_v50 = vpack.c.bf16 %v2510_v46, %v2509_v9  ;;  %v2101_v9 = vld [vmem:[%s4301_s9 + $0x40] sm:$0xff] }
 0x3b8   : > { %3044 = vmatprep.subr.bf16.mxu0 %v3043_v10 }
 0x3ba   : > { %3046 = vmatpush3.bf16.msra.mxu0 %v3043_v10  ;;  %v2511_v10 = vld [vmem:[%s4299_s7 + $0xe0] sm:$0xff] }
 0x3bb   : > { %3048 = vmatprep.subr.bf16.mxu0 %v3047_v49  ;;  %v3091_v44 = vpack.c.bf16 %v2512_v11, %v2511_v10  ;;  %v2535_v11 = vld [vmem:[%s4302_s10] ss:$0 sm:$0xff] }
 0x3be   : > { %3050 = vmatpush3.bf16.msra.mxu0 %v3047_v49  ;;  %v2513_v49 = vld [vmem:[%s4299_s7 + $0xf0] sm:$0xff] }
 0x3bf   : > { %3052 = vmatprep.subr.bf16.mxu0 %v3051_v14  ;;  %v3095_v13 = vpack.c.bf16 %v2514_v12, %v2513_v49 }
 0x3c2   : > { %3054 = vmatpush3.bf16.msra.mxu0 %v3051_v14  ;;  %v2515_v14 = vld [vmem:[%s4299_s7 + $0x100] sm:$0xff] }
 0x3c3   : > { %3056 = vmatprep.subr.bf16.mxu0 %v3055_v20  ;;  %v3099_v15 = vpack.c.bf16 %v2516_v18, %v2515_v14 }
 0x3c6   : > { %3058 = vmatpush3.bf16.msra.mxu0 %v3055_v20  ;;  %v2517_v20 = vld [vmem:[%s4299_s7 + $0x110] sm:$0xff] }
 0x3c7   : > { %3060 = vmatprep.subr.bf16.mxu0 %v3059_v5  ;;  %v3103_v17 = vpack.c.bf16 %v2518_v16, %v2517_v20 }
 0x44e   : > { %v1484_v21 = vpop.f32.mrb[8].mxu0  ;;  %v1678_v22 = vpop.f32.mrb[12].mxu1 }
 0x44f   : > { %v1486_v6 = vpop.f32.mrb[9].mxu0  ;;  %v1680_v23 = vpop.f32.mrb[13].mxu1 }
 0x452   : > { %v1489_v48 = vpop.f32.mrb[10].mxu0  ;;  %v1683_v27 = vpop.f32.mrb[14].mxu1 }
 0x453   : > { %v1491_v29 = vpop.f32.mrb[11].mxu0  ;;  %v1685_v31 = vpop.f32.mrb[15].mxu1 }
 0x484   : > { %v1563_v35 = vpop.f32.mrb[12].mxu0 }
 0x485   : > { %v1564_v38 = vadd.f32 %v1563_v35, %v1484_v21  ;;  %v1565_v39 = vpop.f32.mrb[13].mxu0 }
 0x487   : > { %v1687_v45 = vadd.f32 %v1678_v22, %v1564_v38 }
 0x488   : > { %v1568_v47 = vpop.f32.mrb[14].mxu0 }
 0x489   : > { %v1696_v51 = vadd.f32 %v2490_v43, %v1687_v45  ;;  %v1569_v53 = vadd.f32 %v1568_v47, %v1489_v48  ;;  %v1570_v37 = vpop.f32.mrb[15].mxu0 }
 0x48b   : > { %v1688_v55 = vadd.f32 %v1683_v27, %v1569_v53  ;;  %v1698_v57 = vmax.f32 %v1696_v51, 0.0 }
 0x48d   : > { %v1697_v59 = vadd.f32 %v2490_v43, %v1688_v55  ;;  %v1727_v26 = vrot.slane %v1698_v57, 1  ;;  %v1902_v33 = vrot.slane %v1698_v57, 2  ;;  %v2524_v55 = vld [vmem:[%s4301_s9 + $0x48] sm:$0xff] }
 0x48f   : > { %v4124_v60 = vmax.f32 %v1697_v59, 0.0 }
 0x491   : > { %v1728_v30 = vrot.slane %v4124_v60, 1  ;;  %v1903_v24 = vrot.slane %v4124_v60, 2 }
 0x493   : > { %v1729_v58 = vsel %vm402_vm1, %v1727_v26, %v1728_v30  ;;  %v1904_v28 = vsel %vm602_vm2, %v1902_v33, %v1903_v24  ;;  %v3115_v26 = vpack.c.bf16 %v2527_v25, %v2526_v61  ;;  %v2529_v33 = vld [vmem:[%s4301_s9 + $0x70] sm:$0xff] }
 0x494   : > { %2694 = vmatprep.mubr.msk.f32.mxu0 %vm1730_vm11, %v1729_v58  ;;  %v2531_v58 = vld [vmem:[%s4301_s9 + $0x80] sm:$0xff] }
 0x495   : > { %2695 = vmatmul.mubr.msk.f32.vlgmr.msra.gmra.mrb[16].mxu0 %vm1730_vm11, %v1728_v30  ;;  %v2528_v30 = vld [vmem:[%s4301_s9 + $0x68] sm:$0xff] }
 0x496   : > { %3062 = vmatpush3.bf16.msra.mxu0 %v3059_v5  ;;  %2721 = vmatprep.mubr.msk.f32.mxu0 %vm1730_vm11, %v1698_v57  ;;  %v2521_v5 = vld [vmem:[%s4300_s8] ss:$0 sm:$0xff]  ;;  %v2525_v57 = vld [vmem:[%s4301_s9 + $0x50] sm:$0xff] }
 0x497   : > { %3064 = vmatprep.subr.bf16.mxu0 %v3063_v34 }
 0x49a   : > { %3066 = vmatpush3.bf16.msra.mxu0 %v3063_v34 }
 0x49b   : > { %3068 = vmatprep.subr.bf16.mxu0 %v3067_v63 }
 0x49e   : > { %3070 = vmatpush3.bf16.msra.mxu0 %v3067_v63 }
 0x49f   : > { %3072 = vmatprep.subr.bf16.mxu0 %v3071_v0 }
 0x4a2   : > { %3074 = vmatpush3.bf16.msra.mxu0 %v3071_v0 }
 0x4a3   : > { %3076 = vmatprep.subr.bf16.mxu0 %v3075_v1 }
 0x4a6   : > { %3078 = vmatpush3.bf16.msra.mxu0 %v3075_v1  ;;  %v3127_v1 = vpack.c.bf16 %v2096_v41, %v2095_v36 }
 0x4a7   : > { %3080 = vmatprep.subr.bf16.mxu0 %v3079_v3 }
 0x4aa   : > { %3082 = vmatpush3.bf16.msra.mxu0 %v3079_v3  ;;  %v3130_v3 = vpack.c.bf16 %v2098_v52, %v2097_v2 }
 0x4ab   : > { %3084 = vmatprep.subr.bf16.mxu0 %v3083_v8 }
 0x4ad   : > { %2722 = vmatmul.mubr.msk.f32.vlgmr.msra.gmra.mrb[16].mxu0 %vm1730_vm11, %v4124_v60  ;;  %v3112_v60 = vpack.c.bf16 %v2525_v57, %v2524_v55 }
 0x4ae   : > { %3086 = vmatpush3.bf16.msra.mxu0 %v3083_v8  ;;  %2748 = vmatprep.mubr.msk.f32.mxu0 %vm1730_vm11, %v1904_v28  ;;  %v2532_v28 = vld [vmem:[%s4301_s9 + $0x88] sm:$0xff]  ;;  %v3133_v8 = vpack.c.bf16 %v2100_v7, %v2099_v4 }
 0x4af   : > { %3088 = vmatprep.subr.bf16.mxu0 %v3087_v50 }
 0x4b2   : > { %3090 = vmatpush3.bf16.msra.mxu0 %v3087_v50 }
 0x4b3   : > { %3092 = vmatprep.subr.bf16.mxu0 %v3091_v44 }
 0x4b6   : > { %3094 = vmatpush3.bf16.msra.mxu0 %v3091_v44 }
 0x4b7   : > { %3096 = vmatprep.subr.bf16.mxu0 %v3095_v13 }
 0x4ba   : > { %3098 = vmatpush3.bf16.msra.mxu0 %v3095_v13 }
 0x4bb   : > { %3100 = vmatprep.subr.bf16.mxu0 %v3099_v15 }
 0x4be   : > { %3102 = vmatpush3.bf16.msra.mxu0 %v3099_v15 }
 0x4bf   : > { %3104 = vmatprep.subr.bf16.mxu0 %v3103_v17 }
 0x4c2   : > { %3106 = vmatpush3.bf16.msra.mxu0 %v3103_v17 }
 0x4c5   : > { %2749 = vmatmul.mubr.msk.f32.vlgmr.msra.gmra.mrb[16].mxu0 %vm1730_vm11, %v1903_v24  ;;  %v3118_v24 = vpack.c.bf16 %v2529_v33, %v2528_v30 }
 0x598   : > { %v2750_v21 = vpop.f32.mrb[16].mxu0 }
 0x599   : > { %v1994_v22 = vadd.f32 %v2750_v21, %v2521_v5  ;;  %v1975_v6 = vpop.f32.mrb[17].mxu0 }
 0x59a   : > { %v1993_v23 = vadd.f32 %v2521_v5, %v1975_v6 }
 0x59b   : > { %v1996_v48 = vmax.f32 %v1994_v22, 0.0 }
 0x59c   : > { %v1995_v27 = vmax.f32 %v1993_v23, 0.0 }
 0x59e   : > { %v3196_v29 = vpack.i.bf16 %v1996_v48, %v1995_v27 }
 0x5a0   : > { %3197 = vrot.lane.b32.xlu0 %v3196_v29, %s3210_s27 }
 0x612   : > { %v3198_v31 = vpop.permute.xlu0 %3197 }
 0x613   : > { %v3200_v35 = vunpack.i.h.bf16 %v3198_v31  ;;  %v3199_v38 = vunpack.i.l.bf16 %v3198_v31 }
 0x615   : > { %v2006_v39 = vmax.f32 %v1996_v48, %v3200_v35  ;;  %v2005_v43 = vmax.f32 %v1995_v27, %v3199_v38 }
 0x617   : > { %v2010_v45 = vrot.slane %v2006_v39, 1  ;;  %v2009_v47 = vrot.slane %v2005_v43, 1 }
 0x619   : > { %v2015_v51 = vmax.f32 %v2006_v39, %v2010_v45  ;;  %v2011_v53 = vsel %vm402_vm1, %v2009_v47, %v2010_v45  ;;  %vm2268_vm1 = vcmask 125952  }
 0x61a   : > { %v2014_v37 = vmax.f32 %v2005_v43, %v2011_v53 }
 0x61c   : > { %v3108_v59 = vpack.c.bf16 %v2015_v51, %v2014_v37 }
 0x61e   : > { %3110 = vmatpush3.bf16.msk.msra.mxu1 %vm3109_vm14, %v3108_v59 }
 0x61f   : > { %3111 = vmatprep.subr.bf16.mxu1 %v3211_v54 }
 0x621   : > { %2756 = vmatmul.mubr.msk.f32.vlgmr.msra.gmra.mrb[16].mxu1 %vm2016_vm15, %v3847_v56  ;;  %v2530_v56 = vld [vmem:[%s4301_s9 + $0x78] sm:$0xff] }
 0x622   : > { %3113 = vmatpush3.bf16.msra.mxu1 %v3112_v60  ;;  %2776 = vmatprep.mubr.msk.f32.mxu1 %vm3213_vm12, %v3209_v19  ;;  %v3121_v34 = vpack.c.bf16 %v2531_v58, %v2530_v56 }
 0x623   : > { %3114 = vmatprep.subr.bf16.mxu1 %v3211_v54 }
 0x626   : > { %3116 = vmatpush3.bf16.msra.mxu1 %v3115_v26 }
 0x627   : > { %3117 = vmatprep.subr.bf16.mxu1 %v3211_v54 }
 0x62a   : > { %3119 = vmatpush3.bf16.msra.mxu1 %v3118_v24 }
 0x62b   : > { %3120 = vmatprep.subr.bf16.mxu1 %v3211_v54 }
 0x62e   : > { %3122 = vmatpush3.bf16.msra.mxu1 %v3121_v34 }
 0x62f   : > { %2774 = vmatprep.subr.mxu1 %v3209_v19 }
 0x632   : > { %2775 = vmatpush3.msra.mxu1 %v2532_v28 }
 0x633   : > { %3123 = vmatprep.subr.bf16.mxu1 %v3211_v54 }
 0x6f4   : > { %v2089_v63 = vpop.f32.mrb[16].mxu1 }
 0x6f5   : > { %v2113_v42 = vrot.slane %v2089_v63, 1  ;;  %v2757_v0 = vpop.f32.mrb[17].mxu1 }
 0x6f7   : > { %2777 = vmatmul.mubr.msk.f32.vlgmr.msra.gmra.mrb[18].mxu1 %vm2114_vm0, %v2113_v42 }
 0x6f8   : > { %3125 = vmatpush3.bf16.msra.mxu1 %v3124_v40  ;;  %2797 = vmatprep.mubr.msk.f32.mxu1 %vm3213_vm12, %v3209_v19 }
 0x6f9   : > { %3126 = vmatprep.subr.bf16.mxu1 %v3211_v54 }
 0x6fc   : > { %3128 = vmatpush3.bf16.msra.mxu1 %v3127_v1 }
 0x6fd   : > { %3129 = vmatprep.subr.bf16.mxu1 %v3211_v54 }
 0x700   : > { %3131 = vmatpush3.bf16.msra.mxu1 %v3130_v3 }
 0x701   : > { %3132 = vmatprep.subr.bf16.mxu1 %v3211_v54 }
 0x704   : > { %3134 = vmatpush3.bf16.msra.mxu1 %v3133_v8 }
 0x705   : > { %2795 = vmatprep.subr.mxu1 %v3209_v19 }
 0x708   : > { %2796 = vmatpush3.msra.mxu1 %v2101_v9 }
 0x709   : > { %2798 = vmatmul.mubr.msk.f32.vlgmr.msra.gmra.mrb[20].mxu1 %vm2114_vm0, %v2089_v63 }
 0x7ca   : > { %v2183_v46 = vpop.f32.mrb[18].mxu1 }
 0x7cb   : > { %v2778_v50 = vpop.f32.mrb[19].mxu1 }
 0x7dc   : > { %v2255_v10 = vpop.f32.mrb[20].mxu1 }
 0x7dd   : > { %v2256_v44 = vadd.f32 %v2255_v10, %v2183_v46  ;;  %v2799_v54 = vpop.f32.mrb[21].mxu1 }
 0x7df   : > { %v2266_v49 = vadd.f32 %v2535_v11, %v2256_v44 }
 0x7e1   : > { %v2267_v19 = vmax.f32 %v2266_v49, 0.0 }
 0x7e3   : > { %2269 = vst.msk [vmem:[%s384_s13] sm:$0xf] %vm2268_vm1, %v2267_v19 }
 0x7e4 PF: > { %s21_s17 = sadd.s32 1, %s3207_s17  }
 0x7e5   : > { %p18_p4 = scmp.ge.s32.totalorder %s21_s17, 4  }
 0x7e7   :  { %20 = sbr.rel (!%p18_p4) target bundleno = 1 (0x1), region = 103 }

</bundles_post_ra>
